<compile_context>
chip_gen: v7x
topology: tpu7x:2x2x1
jax: 0.10.0
libtpu: 0.0.40
codegen_flags: <defaults>
</compile_context>

<pallas_src>
import jax
import jax.numpy as jnp
from jax.experimental import pallas as pl
from jax.experimental.pallas import tpu as pltpu


PATCH = 4                          # patch-embed stride
CIN = 3                            # RGB
KP = CIN * PATCH * PATCH           # 48: patch-embed fan-in
TRUNK = 32                         # trunk channels (only used for parameter shapes)
C0, C1, C2 = 32, 64, 256           # per-level output channels (SAM2: 32 / 64 / 256)


# ----------------------------------------------------------------------------- kernel

def _levels_kernel(x0_ref, x1_ref, x2_ref,
                   w0_ref, w1_ref, w2_ref,
                   b0_ref, b1_ref, b2_ref,
                   o0_ref, o1_ref, o2_ref):
    """One composed bf16 matmul + f32 bias per pyramid level.

        o_L = (Wc_L @ x_L + bc_L)        with Wc_L = W_L @ Wp pre-composed outside.

    Operands bf16, MXU accumulation f32, outputs stored bf16.  Every store is
    lane-dense along the token axis (block token counts are multiples of 128
    or the full extent)."""
    def level(x_ref, w_ref, b_ref, o_ref):
        acc = jnp.dot(w_ref[...], x_ref[...], preferred_element_type=jnp.float32)
        o_ref[...] = (acc + b_ref[...]).astype(o_ref.dtype)

    level(x0_ref, w0_ref, b0_ref, o0_ref)
    level(x1_ref, w1_ref, b1_ref, o1_ref)
    level(x2_ref, w2_ref, b2_ref, o2_ref)


def _step_vmem_bytes(blk2):
    """Double-buffered per-step VMEM footprint of the token blocks (bf16 in/out)."""
    blk0, blk1 = 16 * blk2, 4 * blk2
    in_bytes = 2 * KP * (blk0 + blk1 + blk2)
    out_bytes = 2 * (C0 * blk0 + C1 * blk1 + C2 * blk2)
    return 2 * (in_bytes + out_bytes)


def _choose_grid_steps(h2, w2, *, vmem_budget=12 << 20, min_steps=4):
    """Pick grid steps G (a divisor of h2, grouping level-2 rows).

    Prefers the SMALLEST G (largest blocks -> least per-step overhead, best HBM
    efficiency) among those whose double-buffered working set fits `vmem_budget`
    AND which still provide >= min_steps steps (>= 2 per TensorCore on megacore
    parts).  If alignment makes min_steps impossible (tiny inputs), take the most
    steps available; if nothing fits the budget, take the smallest blocks."""
    cands = []
    for g in range(1, h2 + 1):
        if h2 % g:
            continue
        blk2 = (h2 // g) * w2
        if g != 1 and blk2 % 128 != 0:     # keep every output block lane-aligned
            continue
        cands.append((g, blk2))
    fitting = [(g, b) for g, b in cands if _step_vmem_bytes(b) <= vmem_budget]
    pool = fitting if fitting else cands
    enough = [g for g, _ in pool if g >= min_steps]
    if enough:
        return min(enough)                 # largest blocks that still give min_steps
    return max(g for g, _ in pool)         # else: as many steps as alignment allows


def _levels_pallas(ops, dims):
    (H0, W0), (H1, W1), (H2, W2) = dims
    hw0, hw1, hw2 = H0 * W0, H1 * W1, H2 * W2
    g = _choose_grid_steps(H2, W2)
    blk2 = (H2 // g) * W2
    blk1, blk0 = 4 * blk2, 16 * blk2

    flops = 2 * KP * (hw0 * C0 + hw1 * C1 + hw2 * C2)
    bytes_accessed = (2 * KP * (hw0 + hw1 + hw2)               # bf16 activations
                      + 2 * KP * (C0 + C1 + C2)                # bf16 composed weights
                      + 4 * (C0 + C1 + C2)                     # f32 biases
                      + 2 * (C0 * hw0 + C1 * hw1 + C2 * hw2))  # bf16 outputs
    cost = pl.CostEstimate(flops=flops, transcendentals=0,
                           bytes_accessed=bytes_accessed)

    return pl.pallas_call(
        _levels_kernel,
        out_shape=(
            jax.ShapeDtypeStruct((C0, hw0), jnp.bfloat16),
            jax.ShapeDtypeStruct((C1, hw1), jnp.bfloat16),
            jax.ShapeDtypeStruct((C2, hw2), jnp.bfloat16),
        ),
        grid=(g,),
        in_specs=[
            pl.BlockSpec((KP, blk0), lambda i: (0, i)),      # patch tokens L0
            pl.BlockSpec((KP, blk1), lambda i: (0, i)),      # pooled tokens L1
            pl.BlockSpec((KP, blk2), lambda i: (0, i)),      # pooled tokens L2
            pl.BlockSpec((C0, KP), lambda i: (0, 0)),        # composed W0
            pl.BlockSpec((C1, KP), lambda i: (0, 0)),        # composed W1
            pl.BlockSpec((C2, KP), lambda i: (0, 0)),        # composed W2
            pl.BlockSpec((C0, 1), lambda i: (0, 0)),         # composed b0
            pl.BlockSpec((C1, 1), lambda i: (0, 0)),         # composed b1
            pl.BlockSpec((C2, 1), lambda i: (0, 0)),         # composed b2 (+no_mem_embed)
        ],
        out_specs=(
            pl.BlockSpec((C0, blk0), lambda i: (0, i)),
            pl.BlockSpec((C1, blk1), lambda i: (0, i)),
            pl.BlockSpec((C2, blk2), lambda i: (0, i)),
        ),
        compiler_params=pltpu.CompilerParams(
            dimension_semantics=("parallel",),
            vmem_limit_bytes=32 * 1024 * 1024),
        cost_estimate=cost,
    )(ops["x0"], ops["x1"], ops["x2"],
      ops["w0"], ops["w1"], ops["w2"],
      ops["b0"], ops["b1"], ops["b2"])


# ------------------------------------------------------------------------------- glue

def _pool2x2_cm(t, h, w):
    """2x2 average pool of channel-major tokens (c, h*w) -> (c, h/2 * w/2)."""
    c = t.shape[0]
    grid = t.reshape(c, h // 2, 2, w // 2, 2)
    return grid.mean(axis=(2, 4)).reshape(c, (h // 2) * (w // 2))


def _sine_pos_embed(h, w, c):
    """Deterministic sinusoidal position embedding, (h, w, c) f32."""
    nf = c // 2
    y = (jnp.arange(h, dtype=jnp.float32) + 1.0) / h * (2.0 * jnp.pi)
    x = (jnp.arange(w, dtype=jnp.float32) + 1.0) / w * (2.0 * jnp.pi)
    dim_t = 10000.0 ** (2.0 * (jnp.arange(nf, dtype=jnp.float32) // 2) / nf)
    pos_y = y[:, None] / dim_t[None, :]
    pos_x = x[:, None] / dim_t[None, :]
    pos_y = jnp.stack([jnp.sin(pos_y[:, 0::2]), jnp.cos(pos_y[:, 1::2])], axis=-1).reshape(h, nf)
    pos_x = jnp.stack([jnp.sin(pos_x[:, 0::2]), jnp.cos(pos_x[:, 1::2])], axis=-1).reshape(w, nf)
    pos = jnp.concatenate(
        [jnp.broadcast_to(pos_y[:, None, :], (h, w, nf)),
         jnp.broadcast_to(pos_x[None, :, :], (h, w, nf))], axis=-1)
    return pos.astype(jnp.float32)


def _encoder_operands(params, x):
    """Build channel-major bf16 activations and PRE-COMPOSED bf16 weights.

    Shared with the pure-JAX reference so both paths see identical operands."""
    B, cin, H, W = x.shape
    assert B == 1 and cin == CIN and H % (PATCH * 4) == 0 and W % (PATCH * 4) == 0
    H0, W0 = H // PATCH, W // PATCH
    H1, W1 = H0 // 2, W0 // 2
    H2, W2 = H1 // 2, W1 // 2

    # Channel-major space-to-depth patch tokens, (KP, H0*W0), built straight from NCHW.
    xp = x.reshape(CIN, H0, PATCH, W0, PATCH)
    xp = jnp.transpose(xp, (0, 2, 4, 1, 3)).reshape(KP, H0 * W0)
    x0 = xp.astype(jnp.float32)
    # Pooling commutes with the (linear) composed projection: pool(W@x) == W@pool(x).
    x1 = _pool2x2_cm(x0, H0, W0)
    x2 = _pool2x2_cm(x1, H1, W1)

    bf, f32 = jnp.bfloat16, jnp.float32
    wp_t = params["w_patch"].T            # (TRUNK, KP)
    bp = params["b_patch"]                # (TRUNK,)

    def compose(wL, bL, extra=None):
        wc = (wL.T @ wp_t).astype(bf)     # (C_L, KP), composed in f32 then bf16
        bc = wL.T @ bp + bL
        if extra is not None:
            bc = bc + extra
        return wc, bc.reshape(-1, 1).astype(f32)

    w0c, b0c = compose(params["w0"], params["b0"])
    w1c, b1c = compose(params["w1"], params["b1"])
    # directly_add_no_mem_embed: fold (1,1,C2) no_mem_embed into the level-2 bias.
    w2c, b2c = compose(params["w2"], params["b2"], params["no_mem_embed"].reshape(C2))

    ops = {"x0": x0.astype(bf), "x1": x1.astype(bf), "x2": x2.astype(bf),
           "w0": w0c, "w1": w1c, "w2": w2c,
           "b0": b0c, "b1": b1c, "b2": b2c}
    dims = ((H0, W0), (H1, W1), (H2, W2))
    return ops, dims


def _package_outputs(o0, o1, o2, dims):
    """Same output contract as the torch module (B == 1); cast back to f32 here."""
    (H0, W0), (H1, W1), (H2, W2) = dims
    o0 = o0.astype(jnp.float32)
    o1 = o1.astype(jnp.float32)
    o2 = o2.astype(jnp.float32)
    image_embeddings = o2.reshape(1, C2, H2, W2)          # permute(1,2,0).reshape
    high_res_features1 = o0.reshape(1, C0, H0, W0)
    high_res_features2 = o1.reshape(1, C1, H1, W1)
    current_vision_feat = o2.T.reshape(H2 * W2, 1, C2)    # (HW, B, C)
    vision_pos_embed = _sine_pos_embed(H2, W2, C2).reshape(H2 * W2, 1, C2)
    return (image_embeddings, high_res_features1, high_res_features2,
            current_vision_feat, vision_pos_embed)


# ------------------------------------------------------------------------- parameters

def init_params(key):
    ks = jax.random.split(key, 5)
    s = 0.02
    return {
        "w_patch": s * jax.random.normal(ks[0], (KP, TRUNK), jnp.float32),
        "b_patch": jnp.zeros((TRUNK,), jnp.float32),
        "w0": s * jax.random.normal(ks[1], (TRUNK, C0), jnp.float32),
        "b0": jnp.zeros((C0,), jnp.float32),
        "w1": s * jax.random.normal(ks[2], (TRUNK, C1), jnp.float32),
        "b1": jnp.zeros((C1,), jnp.float32),
        "w2": s * jax.random.normal(ks[3], (TRUNK, C2), jnp.float32),
        "b2": jnp.zeros((C2,), jnp.float32),
        # SAM2 `no_mem_embed` (nn.Parameter of shape (1, 1, hidden_dim)); synthetic init.
        "no_mem_embed": s * jax.random.normal(ks[4], (1, 1, C2), jnp.float32),
    }


# ---------------------------------------------------------------------------- forward

def image_encoder_forward(params, x):
    """Mirror of ImageEncoder.forward.  x is NCHW (B=1, 3, H, W)."""
    ops, dims = _encoder_operands(params, x)
    o0, o1, o2 = _levels_pallas(ops, dims)
    return _package_outputs(o0, o1, o2, dims)


def image_encoder_reference(params, x):
    """Pure-JAX reference mirroring the kernel math exactly (Pallas plumbing check)."""
    ops, dims = _encoder_operands(params, x)

    def level(xL, wL, bL):
        acc = jnp.dot(wL, xL, preferred_element_type=jnp.float32) + bL
        return acc.astype(jnp.bfloat16)

    o0 = level(ops["x0"], ops["w0"], ops["b0"])
    o1 = level(ops["x1"], ops["w1"], ops["b1"])
    o2 = level(ops["x2"], ops["w2"], ops["b2"])
    return _package_outputs(o0, o1, o2, dims)


# ------------------------------------------------------------------------------- main

if __name__ == "__main__":
    key = jax.random.PRNGKey(0)
    pkey, xkey = jax.random.split(key)
    params = init_params(pkey)
    # Quarter-resolution SAM2 input -> feature sizes (64,64) / (32,32) / (16,16).
    x = jax.random.normal(xkey, (1, CIN, 256, 256), dtype=jnp.float32)

    outs = jax.block_until_ready(jax.jit(image_encoder_forward)(params, x))
    refs = jax.block_until_ready(jax.jit(image_encoder_reference)(params, x))

    img_emb, hrf1, hrf2, cur_feat, pos_emb = outs
    assert img_emb.shape == (1, 256, 16, 16)
    assert hrf1.shape == (1, 32, 64, 64)
    assert hrf2.shape == (1, 64, 32, 32)
    assert cur_feat.shape == (256, 1, 256)
    assert pos_emb.shape == (256, 1, 256)
    assert all(bool(jnp.isfinite(o).all()) for o in outs)
    for got, want in zip(outs, refs):
        err = float(jnp.max(jnp.abs(got - want)))
        assert jnp.allclose(got, want, rtol=2e-2, atol=1e-3), err

    print("KERNEL_OK")
</pallas_src>

<mosaic_0001>
module attributes {stable_mosaic.version = 11 : i64} {
  func.func @_levels_kernel(%arg0: i32, %arg1: memref<48x2048xbf16, #tpu.memory_space<vmem>>, %arg2: memref<48x512xbf16, #tpu.memory_space<vmem>>, %arg3: memref<48x128xbf16, #tpu.memory_space<vmem>>, %arg4: memref<32x48xbf16, #tpu.memory_space<vmem>>, %arg5: memref<64x48xbf16, #tpu.memory_space<vmem>>, %arg6: memref<256x48xbf16, #tpu.memory_space<vmem>>, %arg7: memref<32x1xf32, #tpu.memory_space<vmem>>, %arg8: memref<64x1xf32, #tpu.memory_space<vmem>>, %arg9: memref<256x1xf32, #tpu.memory_space<vmem>>, %arg10: memref<32x2048xbf16, #tpu.memory_space<vmem>>, %arg11: memref<64x512xbf16, #tpu.memory_space<vmem>>, %arg12: memref<256x128xbf16, #tpu.memory_space<vmem>>) attributes {dimension_semantics = [#tpu.dimension_semantics<parallel>], iteration_bounds = array<i64: 2>, scalar_prefetch = 0 : i64, scratch_operands = 0 : i64, tpu.core_type = #tpu.core_type<tc>, window_params = [{transform_indices = @transform_0, window_bounds = array<i64: 48, 2048>}, {transform_indices = @transform_1, window_bounds = array<i64: 48, 512>}, {transform_indices = @transform_2, window_bounds = array<i64: 48, 128>}, {pipeline_mode = #tpu.pipeline_mode<synchronous>, transform_indices = @transform_3, window_bounds = array<i64: 32, 48>}, {pipeline_mode = #tpu.pipeline_mode<synchronous>, transform_indices = @transform_4, window_bounds = array<i64: 64, 48>}, {pipeline_mode = #tpu.pipeline_mode<synchronous>, transform_indices = @transform_5, window_bounds = array<i64: 256, 48>}, {pipeline_mode = #tpu.pipeline_mode<synchronous>, transform_indices = @transform_6, window_bounds = array<i64: 32, 1>}, {pipeline_mode = #tpu.pipeline_mode<synchronous>, transform_indices = @transform_7, window_bounds = array<i64: 64, 1>}, {pipeline_mode = #tpu.pipeline_mode<synchronous>, transform_indices = @transform_8, window_bounds = array<i64: 256, 1>}, {transform_indices = @transform_9, window_bounds = array<i64: 32, 2048>}, {transform_indices = @transform_10, window_bounds = array<i64: 64, 512>}, {transform_indices = @transform_11, window_bounds = array<i64: 256, 128>}]} {
    %c0 = arith.constant 0 : index
    %c0_0 = arith.constant 0 : index
    %0 = vector.load %arg4[%c0, %c0_0] : memref<32x48xbf16, #tpu.memory_space<vmem>>, vector<32x48xbf16>
    %c0_1 = arith.constant 0 : index
    %c0_2 = arith.constant 0 : index
    %1 = vector.load %arg1[%c0_1, %c0_2] : memref<48x2048xbf16, #tpu.memory_space<vmem>>, vector<48x2048xbf16>
    %cst = arith.constant dense<0.000000e+00> : vector<32x2048xf32>
    %2 = tpu.matmul %0, %1, %cst {dimension_numbers = #tpu.dot_dimension_numbers<[1], [0], [0], [1], [0, 0, 1, 1], [], []>} : vector<32x48xbf16>, vector<48x2048xbf16>, vector<32x2048xf32> -> vector<32x2048xf32>
    %c0_3 = arith.constant 0 : index
    %c0_4 = arith.constant 0 : index
    %3 = vector.load %arg7[%c0_3, %c0_4] : memref<32x1xf32, #tpu.memory_space<vmem>>, vector<32x1xf32>
    %4 = vector.broadcast %3 : vector<32x1xf32> to vector<32x2048xf32>
    %5 = arith.addf %2, %4 : vector<32x2048xf32>
    %6 = arith.truncf %5 : vector<32x2048xf32> to vector<32x2048xbf16>
    %c0_5 = arith.constant 0 : index
    %c0_6 = arith.constant 0 : index
    %7 = vector.load %arg10[%c0_5, %c0_6] : memref<32x2048xbf16, #tpu.memory_space<vmem>>, vector<32x2048xbf16>
    tpu.vector_store %arg10[%c0_5, %c0_6], %6 {strides = array<i32>} : memref<32x2048xbf16, #tpu.memory_space<vmem>>, vector<32x2048xbf16>,
    %c0_7 = arith.constant 0 : index
    %c0_8 = arith.constant 0 : index
    %8 = vector.load %arg5[%c0_7, %c0_8] : memref<64x48xbf16, #tpu.memory_space<vmem>>, vector<64x48xbf16>
    %c0_9 = arith.constant 0 : index
    %c0_10 = arith.constant 0 : index
    %9 = vector.load %arg2[%c0_9, %c0_10] : memref<48x512xbf16, #tpu.memory_space<vmem>>, vector<48x512xbf16>
    %cst_11 = arith.constant dense<0.000000e+00> : vector<64x512xf32>
    %10 = tpu.matmul %8, %9, %cst_11 {dimension_numbers = #tpu.dot_dimension_numbers<[1], [0], [0], [1], [0, 0, 1, 1], [], []>} : vector<64x48xbf16>, vector<48x512xbf16>, vector<64x512xf32> -> vector<64x512xf32>
    %c0_12 = arith.constant 0 : index
    %c0_13 = arith.constant 0 : index
    %11 = vector.load %arg8[%c0_12, %c0_13] : memref<64x1xf32, #tpu.memory_space<vmem>>, vector<64x1xf32>
    %12 = vector.broadcast %11 : vector<64x1xf32> to vector<64x512xf32>
    %13 = arith.addf %10, %12 : vector<64x512xf32>
    %14 = arith.truncf %13 : vector<64x512xf32> to vector<64x512xbf16>
    %c0_14 = arith.constant 0 : index
    %c0_15 = arith.constant 0 : index
    %15 = vector.load %arg11[%c0_14, %c0_15] : memref<64x512xbf16, #tpu.memory_space<vmem>>, vector<64x512xbf16>
    tpu.vector_store %arg11[%c0_14, %c0_15], %14 {strides = array<i32>} : memref<64x512xbf16, #tpu.memory_space<vmem>>, vector<64x512xbf16>,
    %c0_16 = arith.constant 0 : index
    %c0_17 = arith.constant 0 : index
    %16 = vector.load %arg6[%c0_16, %c0_17] : memref<256x48xbf16, #tpu.memory_space<vmem>>, vector<256x48xbf16>
    %c0_18 = arith.constant 0 : index
    %c0_19 = arith.constant 0 : index
    %17 = vector.load %arg3[%c0_18, %c0_19] : memref<48x128xbf16, #tpu.memory_space<vmem>>, vector<48x128xbf16>
    %cst_20 = arith.constant dense<0.000000e+00> : vector<256x128xf32>
    %18 = tpu.matmul %16, %17, %cst_20 {dimension_numbers = #tpu.dot_dimension_numbers<[1], [0], [0], [1], [0, 0, 1, 1], [], []>} : vector<256x48xbf16>, vector<48x128xbf16>, vector<256x128xf32> -> vector<256x128xf32>
    %c0_21 = arith.constant 0 : index
    %c0_22 = arith.constant 0 : index
    %19 = vector.load %arg9[%c0_21, %c0_22] : memref<256x1xf32, #tpu.memory_space<vmem>>, vector<256x1xf32>
    %20 = vector.broadcast %19 : vector<256x1xf32> to vector<256x128xf32>
    %21 = arith.addf %18, %20 : vector<256x128xf32>
    %22 = arith.truncf %21 : vector<256x128xf32> to vector<256x128xbf16>
    %c0_23 = arith.constant 0 : index
    %c0_24 = arith.constant 0 : index
    %23 = vector.load %arg12[%c0_23, %c0_24] : memref<256x128xbf16, #tpu.memory_space<vmem>>, vector<256x128xbf16>
    tpu.vector_store %arg12[%c0_23, %c0_24], %22 {strides = array<i32>} : memref<256x128xbf16, #tpu.memory_space<vmem>>, vector<256x128xbf16>,
    return
  }
  func.func @transform_0(%arg0: i32) -> (i32, i32) {
    %c0_i32 = arith.constant 0 : i32
    %c0_i32_0 = arith.constant 0 : i32
    return %c0_i32, %arg0 : i32, i32
  }
  func.func @transform_1(%arg0: i32) -> (i32, i32) {
    %c0_i32 = arith.constant 0 : i32
    %c0_i32_0 = arith.constant 0 : i32
    return %c0_i32, %arg0 : i32, i32
  }
  func.func @transform_2(%arg0: i32) -> (i32, i32) {
    %c0_i32 = arith.constant 0 : i32
    %c0_i32_0 = arith.constant 0 : i32
    return %c0_i32, %arg0 : i32, i32
  }
  func.func @transform_3(%arg0: i32) -> (i32, i32) {
    %c0_i32 = arith.constant 0 : i32
    %c0_i32_0 = arith.constant 0 : i32
    %c0_i32_1 = arith.constant 0 : i32
    return %c0_i32, %c0_i32_0 : i32, i32
  }
  func.func @transform_4(%arg0: i32) -> (i32, i32) {
    %c0_i32 = arith.constant 0 : i32
    %c0_i32_0 = arith.constant 0 : i32
    %c0_i32_1 = arith.constant 0 : i32
    return %c0_i32, %c0_i32_0 : i32, i32
  }
  func.func @transform_5(%arg0: i32) -> (i32, i32) {
    %c0_i32 = arith.constant 0 : i32
    %c0_i32_0 = arith.constant 0 : i32
    %c0_i32_1 = arith.constant 0 : i32
    return %c0_i32, %c0_i32_0 : i32, i32
  }
  func.func @transform_6(%arg0: i32) -> (i32, i32) {
    %c0_i32 = arith.constant 0 : i32
    %c0_i32_0 = arith.constant 0 : i32
    %c0_i32_1 = arith.constant 0 : i32
    return %c0_i32, %c0_i32_0 : i32, i32
  }
  func.func @transform_7(%arg0: i32) -> (i32, i32) {
    %c0_i32 = arith.constant 0 : i32
    %c0_i32_0 = arith.constant 0 : i32
    %c0_i32_1 = arith.constant 0 : i32
    return %c0_i32, %c0_i32_0 : i32, i32
  }
  func.func @transform_8(%arg0: i32) -> (i32, i32) {
    %c0_i32 = arith.constant 0 : i32
    %c0_i32_0 = arith.constant 0 : i32
    %c0_i32_1 = arith.constant 0 : i32
    return %c0_i32, %c0_i32_0 : i32, i32
  }
  func.func @transform_9(%arg0: i32) -> (i32, i32) {
    %c0_i32 = arith.constant 0 : i32
    %c0_i32_0 = arith.constant 0 : i32
    return %c0_i32, %arg0 : i32, i32
  }
  func.func @transform_10(%arg0: i32) -> (i32, i32) {
    %c0_i32 = arith.constant 0 : i32
    %c0_i32_0 = arith.constant 0 : i32
    return %c0_i32, %arg0 : i32, i32
  }
  func.func @transform_11(%arg0: i32) -> (i32, i32) {
    %c0_i32 = arith.constant 0 : i32
    %c0_i32_0 = arith.constant 0 : i32
    return %c0_i32, %arg0 : i32, i32
  }
}

</mosaic_0001>

<bundles_post_ra>
// kernel: image_encoder_forward.1
= control target key start
LH: loop header
LB: loop body
LE: loop exit
PB: predicated region body
PF: predicated region fallthrough
CT: control target
= control target key end

     0   :  { %s3843_s17 = smov 0   ;;  %s3845_s18 = smov 0   ;;  %s4812_s0 = inlined_call_operand.vmem [shape: bf16[48,4096], index: 0, kind: input, shape index: {}]   ;;  %s4813_s1 = inlined_call_operand.vmem [shape: bf16[48,1024], index: 1, kind: input, shape index: {}]   ;;  %s4814_s2 = inlined_call_operand.vmem [shape: bf16[48,256], index: 2, kind: input, shape index: {}]   ;;  %s4815_s3 = inlined_call_operand.vmem [shape: bf16[32,48], index: 3, kind: input, shape index: {}]   ;;  %s4816_s4 = inlined_call_operand.vmem [shape: bf16[64,48], index: 4, kind: input, shape index: {}]   ;;  %s4817_s5 = inlined_call_operand.vmem [shape: bf16[256,48], index: 5, kind: input, shape index: {}]   ;;  %s4818_s6 = inlined_call_operand.vmem [shape: f32[32,1], index: 6, kind: input, shape index: {}]   ;;  %s4819_s7 = inlined_call_operand.vmem [shape: f32[64,1], index: 7, kind: input, shape index: {}]   ;;  %s4820_s8 = inlined_call_operand.vmem [shape: f32[256,1], index: 8, kind: input, shape index: {}]   ;;  %s4821_s9 = inlined_call_operand.vmem [shape: bf16[32,4096], index: 9, kind: output, shape index: {0}]   ;;  %s4822_s10 = inlined_call_operand.vmem [shape: bf16[64,1024], index: 10, kind: output, shape index: {1}]   ;;  %s4823_s11 = inlined_call_operand.vmem [shape: bf16[256,256], index: 11, kind: output, shape index: {2}]  }
   0x1   :  { %s3847_s19 = smov 0  }
   0x2 LB: > { %s3859_s20 = sadd.s32 4294967295, %s3780_s19   ;;  %s3862_s21 = sadd.s32 1, %s3780_s19   ;;  %s3780_s19 = sphi %s3847_s19, %s4828_s19   ;;  %s3776_s18 = sphi %s3845_s18, %s4827_s18   ;;  %s3772_s17 = sphi %s3843_s17, %s4826_s17  }
   0x3   : > { %s26_s22 = ssub.s32 %s3780_s19, %s3862_s21  ;;  %s29_s23 = sadd.s32 1, %s3776_s18 }
   0x4   : > { %p27_p0 = scmp.eq.s32.totalorder %s26_s22, 0  ;;  %p36_p1 = scmp.ne.s32.totalorder %s3776_s18, %s3772_s17 }
   0x5   : > { %p37_p2 = scmp.eq.s32.totalorder %s3780_s19, 0  ;;  %p244_p3 = scmp.eq.s32.totalorder %s3859_s20, 1 }
   0x6   : > { %s3872_s24 = scalar_select %p27_p0, %s3776_s18, %s29_s23  }
   0x7   : > { %p3874_p4 = por %p37_p2, %p36_p1  ;;  %p3878_p5 = por %p244_p3, %p36_p1 }
   0x8   : > { %p3221_p6 = scmp.ge.s32.totalorder %s3780_s19, 2 }
   0xa   : > { %336 = sbr.rel (%p3221_p6) target bundleno = 64 (0x40), region = 40 }
  0x11   : > { %339 = sbr.rel (!%p3874_p4) target bundleno = 46 (0x2e), region = 44  ;;  %s341_s27 = sand.u32 (%p3874_p4), 1, %s3776_s18  }
  0x12   : > { %s3446_s28 = sshll.u32 (%p3874_p4), %s3780_s19, 6  ;;  %s3682_s29 = smul.u32 (%p3874_p4), 384, %s341_s27 }
  0x13   : > { %s3890_s13 = scalar_lea.vmem (%p3874_p4), %s4812_s0, %s3446_s28 }
  0x14   : > { %v359_v0 = vld [vmem:[%s3890_s13] sm:$0xff] (%p3874_p4)  ;;  %v361_v1 = vld [vmem:[%s3890_s13 + $0x8] sm:$0xff] (%p3874_p4)  ;;  %v363_v2 = vld [vmem:[%s3890_s13 + $0x10] sm:$0xff] (%p3874_p4)  ;;  %s3898_s14 = scalar_lea.vmem (%p3874_p4), [#allocation2], %s3682_s29 }
  0x15   : > { %v365_v3 = vld [vmem:[%s3890_s13 + $0x18] sm:$0xff] (%p3874_p4)  ;;  %v367_v4 = vld [vmem:[%s3890_s13 + $0x20] sm:$0xff] (%p3874_p4)  ;;  %v369_v5 = vld [vmem:[%s3890_s13 + $0x28] sm:$0xff] (%p3874_p4)  ;;  %360 = vst [vmem:[%s3898_s14] sm:$0xff] (%p3874_p4), %v359_v0 }
  0x16   : > { %362 = vst [vmem:[%s3898_s14 + $0x8] sm:$0xff] (%p3874_p4), %v361_v1  ;;  %364 = vst [vmem:[%s3898_s14 + $0x10] sm:$0xff] (%p3874_p4), %v363_v2  ;;  %v371_v6 = vld [vmem:[%s3890_s13 + $0x30] sm:$0xff] (%p3874_p4)  ;;  %v373_v7 = vld [vmem:[%s3890_s13 + $0x38] sm:$0xff] (%p3874_p4) }
  0x17   : > { %366 = vst [vmem:[%s3898_s14 + $0x18] sm:$0xff] (%p3874_p4), %v365_v3  ;;  %368 = vst [vmem:[%s3898_s14 + $0x20] sm:$0xff] (%p3874_p4), %v367_v4  ;;  %v375_v8 = vld [vmem:[%s3890_s13 + $0x80] sm:$0xff] (%p3874_p4)  ;;  %v377_v9 = vld [vmem:[%s3890_s13 + $0x88] sm:$0xff] (%p3874_p4) }
  0x18   : > { %370 = vst [vmem:[%s3898_s14 + $0x28] sm:$0xff] %v369_v5  ;;  %372 = vst [vmem:[%s3898_s14 + $0x30] sm:$0xff] %v371_v6  ;;  %v379_v10 = vld [vmem:[%s3890_s13 + $0x90] sm:$0xff]  ;;  %v381_v11 = vld [vmem:[%s3890_s13 + $0x98] sm:$0xff] }
  0x19   : > { %374 = vst [vmem:[%s3898_s14 + $0x38] sm:$0xff] %v373_v7  ;;  %376 = vst [vmem:[%s3898_s14 + $0x40] sm:$0xff] %v375_v8  ;;  %v383_v12 = vld [vmem:[%s3890_s13 + $0xa0] sm:$0xff]  ;;  %v385_v13 = vld [vmem:[%s3890_s13 + $0xa8] sm:$0xff] }
  0x1a   : > { %378 = vst [vmem:[%s3898_s14 + $0x48] sm:$0xff] %v377_v9  ;;  %380 = vst [vmem:[%s3898_s14 + $0x50] sm:$0xff] %v379_v10  ;;  %v387_v14 = vld [vmem:[%s3890_s13 + $0xb0] sm:$0xff]  ;;  %v389_v15 = vld [vmem:[%s3890_s13 + $0xb8] sm:$0xff] }
  0x1b   : > { %382 = vst [vmem:[%s3898_s14 + $0x58] sm:$0xff] %v381_v11  ;;  %384 = vst [vmem:[%s3898_s14 + $0x60] sm:$0xff] %v383_v12  ;;  %v391_v16 = vld [vmem:[%s3890_s13 + $0x100] sm:$0xff]  ;;  %v393_v17 = vld [vmem:[%s3890_s13 + $0x108] sm:$0xff] }
  0x1c   : > { %386 = vst [vmem:[%s3898_s14 + $0x68] sm:$0xff] %v385_v13  ;;  %388 = vst [vmem:[%s3898_s14 + $0x70] sm:$0xff] %v387_v14  ;;  %v395_v18 = vld [vmem:[%s3890_s13 + $0x110] sm:$0xff]  ;;  %v397_v19 = vld [vmem:[%s3890_s13 + $0x118] sm:$0xff] }
  0x1d   : > { %390 = vst [vmem:[%s3898_s14 + $0x78] sm:$0xff] %v389_v15  ;;  %392 = vst [vmem:[%s3898_s14 + $0x80] sm:$0xff] %v391_v16  ;;  %v399_v20 = vld [vmem:[%s3890_s13 + $0x120] sm:$0xff]  ;;  %v401_v21 = vld [vmem:[%s3890_s13 + $0x128] sm:$0xff] }
  0x1e   : > { %394 = vst [vmem:[%s3898_s14 + $0x88] sm:$0xff] %v393_v17  ;;  %396 = vst [vmem:[%s3898_s14 + $0x90] sm:$0xff] %v395_v18  ;;  %v403_v22 = vld [vmem:[%s3890_s13 + $0x130] sm:$0xff]  ;;  %v405_v23 = vld [vmem:[%s3890_s13 + $0x138] sm:$0xff] }
  0x1f   : > { %398 = vst [vmem:[%s3898_s14 + $0x98] sm:$0xff] %v397_v19  ;;  %400 = vst [vmem:[%s3898_s14 + $0xa0] sm:$0xff] %v399_v20  ;;  %v407_v24 = vld [vmem:[%s3890_s13 + $0x180] sm:$0xff]  ;;  %v409_v25 = vld [vmem:[%s3890_s13 + $0x188] sm:$0xff] }
  0x20   : > { %402 = vst [vmem:[%s3898_s14 + $0xa8] sm:$0xff] %v401_v21  ;;  %404 = vst [vmem:[%s3898_s14 + $0xb0] sm:$0xff] %v403_v22  ;;  %v411_v26 = vld [vmem:[%s3890_s13 + $0x190] sm:$0xff]  ;;  %v413_v27 = vld [vmem:[%s3890_s13 + $0x198] sm:$0xff] }
  0x21   : > { %406 = vst [vmem:[%s3898_s14 + $0xb8] sm:$0xff] %v405_v23  ;;  %408 = vst [vmem:[%s3898_s14 + $0xc0] sm:$0xff] %v407_v24  ;;  %v415_v28 = vld [vmem:[%s3890_s13 + $0x1a0] sm:$0xff]  ;;  %v417_v29 = vld [vmem:[%s3890_s13 + $0x1a8] sm:$0xff] }
  0x22   : > { %410 = vst [vmem:[%s3898_s14 + $0xc8] sm:$0xff] %v409_v25  ;;  %412 = vst [vmem:[%s3898_s14 + $0xd0] sm:$0xff] %v411_v26  ;;  %v419_v30 = vld [vmem:[%s3890_s13 + $0x1b0] sm:$0xff]  ;;  %v421_v31 = vld [vmem:[%s3890_s13 + $0x1b8] sm:$0xff] }
  0x23   : > { %414 = vst [vmem:[%s3898_s14 + $0xd8] sm:$0xff] %v413_v27  ;;  %416 = vst [vmem:[%s3898_s14 + $0xe0] sm:$0xff] %v415_v28  ;;  %v423_v32 = vld [vmem:[%s3890_s13 + $0x200] sm:$0xff]  ;;  %v425_v33 = vld [vmem:[%s3890_s13 + $0x208] sm:$0xff] }
  0x24   : > { %418 = vst [vmem:[%s3898_s14 + $0xe8] sm:$0xff] %v417_v29  ;;  %420 = vst [vmem:[%s3898_s14 + $0xf0] sm:$0xff] %v419_v30  ;;  %v427_v34 = vld [vmem:[%s3890_s13 + $0x210] sm:$0xff]  ;;  %v429_v35 = vld [vmem:[%s3890_s13 + $0x218] sm:$0xff] }
  0x25   : > { %422 = vst [vmem:[%s3898_s14 + $0xf8] sm:$0xff] %v421_v31  ;;  %424 = vst [vmem:[%s3898_s14 + $0x100] sm:$0xff] %v423_v32  ;;  %v431_v36 = vld [vmem:[%s3890_s13 + $0x220] sm:$0xff]  ;;  %v433_v37 = vld [vmem:[%s3890_s13 + $0x228] sm:$0xff] }
  0x26   : > { %426 = vst [vmem:[%s3898_s14 + $0x108] sm:$0xff] %v425_v33  ;;  %428 = vst [vmem:[%s3898_s14 + $0x110] sm:$0xff] %v427_v34  ;;  %v435_v38 = vld [vmem:[%s3890_s13 + $0x230] sm:$0xff]  ;;  %v437_v39 = vld [vmem:[%s3890_s13 + $0x238] sm:$0xff] }
  0x27   : > { %430 = vst [vmem:[%s3898_s14 + $0x118] sm:$0xff] %v429_v35  ;;  %432 = vst [vmem:[%s3898_s14 + $0x120] sm:$0xff] %v431_v36  ;;  %v439_v40 = vld [vmem:[%s3890_s13 + $0x280] sm:$0xff]  ;;  %v441_v41 = vld [vmem:[%s3890_s13 + $0x288] sm:$0xff] }
  0x28   : > { %434 = vst [vmem:[%s3898_s14 + $0x128] sm:$0xff] %v433_v37  ;;  %436 = vst [vmem:[%s3898_s14 + $0x130] sm:$0xff] %v435_v38  ;;  %v443_v42 = vld [vmem:[%s3890_s13 + $0x290] sm:$0xff]  ;;  %v445_v43 = vld [vmem:[%s3890_s13 + $0x298] sm:$0xff] }
  0x29   : > { %438 = vst [vmem:[%s3898_s14 + $0x138] sm:$0xff] %v437_v39  ;;  %440 = vst [vmem:[%s3898_s14 + $0x140] sm:$0xff] %v439_v40  ;;  %v447_v44 = vld [vmem:[%s3890_s13 + $0x2a0] sm:$0xff]  ;;  %v449_v45 = vld [vmem:[%s3890_s13 + $0x2a8] sm:$0xff] }
  0x2a   : > { %442 = vst [vmem:[%s3898_s14 + $0x148] sm:$0xff] %v441_v41  ;;  %444 = vst [vmem:[%s3898_s14 + $0x150] sm:$0xff] %v443_v42  ;;  %v451_v46 = vld [vmem:[%s3890_s13 + $0x2b0] sm:$0xff]  ;;  %v453_v47 = vld [vmem:[%s3890_s13 + $0x2b8] sm:$0xff] }
  0x2b   : > { %446 = vst [vmem:[%s3898_s14 + $0x158] sm:$0xff] %v445_v43  ;;  %448 = vst [vmem:[%s3898_s14 + $0x160] sm:$0xff] %v447_v44 }
  0x2c   : > { %450 = vst [vmem:[%s3898_s14 + $0x168] sm:$0xff] %v449_v45  ;;  %452 = vst [vmem:[%s3898_s14 + $0x170] sm:$0xff] %v451_v46 }
  0x2d   : > { %454 = vst [vmem:[%s3898_s14 + $0x178] sm:$0xff] %v453_v47 }
  0x2e PF: > { %460 = sbr.rel (!%p3874_p4) target bundleno = 56 (0x38), region = 67  ;;  %s462_s15 = sand.u32 (%p3874_p4), 1, %s3776_s18  }
  0x2f   : > { %s3447_s16 = sshll.u32 (%p3874_p4), %s3780_s19, 4  ;;  %s3683_s22 = smul.u32 (%p3874_p4), 96, %s462_s15 }
  0x30   : > { %s467_s28 = scalar_lea.vmem (%p3874_p4), %s4813_s1, %s3447_s16 }
  0x31   : > { %v480_v48 = vld [vmem:[%s467_s28] sm:$0xff] (%p3874_p4)  ;;  %v482_v49 = vld [vmem:[%s467_s28 + $0x8] sm:$0xff] (%p3874_p4)  ;;  %s464_s29 = scalar_lea.vmem (%p3874_p4), [#allocation3], %s3683_s22 }
  0x32   : > { %v484_v50 = vld [vmem:[%s467_s28 + $0x20] sm:$0xff] (%p3874_p4)  ;;  %v486_v51 = vld [vmem:[%s467_s28 + $0x28] sm:$0xff] (%p3874_p4)  ;;  %481 = vst [vmem:[%s464_s29] sm:$0xff] (%p3874_p4), %v480_v48  ;;  %483 = vst [vmem:[%s464_s29 + $0x8] sm:$0xff] (%p3874_p4), %v482_v49 }
  0x33   : > { %v488_v52 = vld [vmem:[%s467_s28 + $0x40] sm:$0xff] (%p3874_p4)  ;;  %v490_v53 = vld [vmem:[%s467_s28 + $0x48] sm:$0xff] (%p3874_p4)  ;;  %485 = vst [vmem:[%s464_s29 + $0x10] sm:$0xff] (%p3874_p4), %v484_v50  ;;  %487 = vst [vmem:[%s464_s29 + $0x18] sm:$0xff] (%p3874_p4), %v486_v51 }
  0x34   : > { %489 = vst [vmem:[%s464_s29 + $0x20] sm:$0xff] (%p3874_p4), %v488_v52  ;;  %491 = vst [vmem:[%s464_s29 + $0x28] sm:$0xff] (%p3874_p4), %v490_v53  ;;  %v492_v54 = vld [vmem:[%s467_s28 + $0x60] sm:$0xff] (%p3874_p4)  ;;  %v494_v55 = vld [vmem:[%s467_s28 + $0x68] sm:$0xff] (%p3874_p4) }
  0x35   : > { %v496_v56 = vld [vmem:[%s467_s28 + $0x80] sm:$0xff]  ;;  %493 = vst [vmem:[%s464_s29 + $0x30] sm:$0xff] %v492_v54  ;;  %495 = vst [vmem:[%s464_s29 + $0x38] sm:$0xff] %v494_v55  ;;  %v498_v57 = vld [vmem:[%s467_s28 + $0x88] sm:$0xff] }
  0x36   : > { %497 = vst [vmem:[%s464_s29 + $0x40] sm:$0xff] %v496_v56  ;;  %v500_v58 = vld [vmem:[%s467_s28 + $0xa0] sm:$0xff]  ;;  %v502_v59 = vld [vmem:[%s467_s28 + $0xa8] sm:$0xff]  ;;  %499 = vst [vmem:[%s464_s29 + $0x48] sm:$0xff] %v498_v57 }
  0x37   : > { %501 = vst [vmem:[%s464_s29 + $0x50] sm:$0xff] %v500_v58  ;;  %503 = vst [vmem:[%s464_s29 + $0x58] sm:$0xff] %v502_v59 }
  0x38 PF: > { %509 = sbr.rel (!%p3874_p4) target bundleno = 64 (0x40), region = 90  ;;  %s511_s30 = sand.u32 (%p3874_p4), 1, %s3776_s18  }
  0x39   : > { %s3226_s12 = sshll.u32 (%p3874_p4), %s3780_s19, 2  ;;  %s3684_s13 = smul.u32 (%p3874_p4), 24, %s511_s30 }
  0x3a   : > { %s515_s16 = scalar_lea.vmem (%p3874_p4), %s4814_s2, %s3226_s12 }
  0x3b   : > { %v531_v60 = vld [vmem:[%s515_s16] sm:$0xf] (%p3874_p4)  ;;  %v533_v61 = vld [vmem:[%s515_s16 + $0x8] sm:$0xf] (%p3874_p4)  ;;  %v535_v62 = vld [vmem:[%s515_s16 + $0x10] sm:$0xf] (%p3874_p4) }
  0x3c   : > { %v537_v63 = vld [vmem:[%s515_s16 + $0x18] sm:$0xf] (%p3874_p4)  ;;  %v539_v0 = vld [vmem:[%s515_s16 + $0x20] sm:$0xf] (%p3874_p4)  ;;  %s513_s22 = scalar_lea.vmem (%p3874_p4), [#allocation4], %s3684_s13 }
  0x3d   : > { %532 = vst [vmem:[%s513_s22] sm:$0xf] (%p3874_p4), %v531_v60  ;;  %534 = vst [vmem:[%s513_s22 + $0x4] sm:$0xf] (%p3874_p4), %v533_v61  ;;  %v541_v1 = vld [vmem:[%s515_s16 + $0x28] sm:$0xf] (%p3874_p4) }
  0x3e   : > { %536 = vst [vmem:[%s513_s22 + $0x8] sm:$0xf] (%p3874_p4), %v535_v62  ;;  %538 = vst [vmem:[%s513_s22 + $0xc] sm:$0xf] (%p3874_p4), %v537_v63 }
  0x3f   : > { %540 = vst [vmem:[%s513_s22 + $0x10] sm:$0xf] %v539_v0  ;;  %542 = vst [vmem:[%s513_s22 + $0x14] sm:$0xf] %v541_v1 }
  0x40 PF: > { %p3227_p7 = scmp.ge.s32.totalorder %s3780_s19, 1  ;;  %p576_p8 = scmp.lt.s32.totalorder %s3780_s19, 3 }
  0x42   : > { %p577_p9 = pnand %p3227_p7, %p576_p8 }
  0x43   : > { %s4007_s25 = sand.u32 (!%p577_p9), 1, %s3772_s17   ;;  %v3782_v2 = vmov (!%p577_p9), 0   ;;  %v710_v3 = vld [vmem:[%s4818_s6 + $0x10] sm:$0xff] (!%p577_p9)  ;;  %v708_v4 = vld [vmem:[%s4818_s6] sm:$0xff] (!%p577_p9)  ;;  %v711_v5 = vld [vmem:[%s4818_s6 + $0x18] sm:$0xff] (!%p577_p9)  ;;  %vm982_vm0 = vcmask (!%p577_p9), 392192  }
  0x44   : > { %580 = sbr.rel (%p577_p9) target bundleno = 461 (0x1cd), region = 131  ;;  %1021 = vmatprep.mubr.bf16.mxu0 (!%p577_p9), %v3782_v2  ;;  %1074 = vmatprep.mubr.bf16.mxu1 (!%p577_p9), %v3782_v2  ;;  %v709_v25 = vld [vmem:[%s4818_s6 + $0x8] sm:$0xff] (!%p577_p9)  ;;  %v4052_v40 = vld [vmem:[%s4815_s3] sm:$0xff] (!%p577_p9)   ;;  %v1660_v59 = vld [vmem:[%s4819_s7 + $0x18] sm:$0xff] (!%p577_p9)  ;;  %s3229_s13 = sshll.u32 (!%p577_p9), %s4007_s25, 7 }
  0x45   : > { %s3685_s23 = smul.u32 (!%p577_p9), 384, %s4007_s25  ;;  %3714 = vset.pattern.permute.xlu1 (!%p577_p9), %v3782_v2  ;;  %3713 = vset.pattern.permute.xlu0 (!%p577_p9), %v3782_v2  ;;  %v1658_v26 = vld [vmem:[%s4819_s7 + $0x8] sm:$0xff] (!%p577_p9)  ;;  %v1657_v52 = vld [vmem:[%s4819_s7] sm:$0xff] (!%p577_p9)  ;;  %v1659_v63 = vld [vmem:[%s4819_s7 + $0x10] sm:$0xff] (!%p577_p9)  ;;  %s4542_s15 = scalar_lea.vmem (!%p577_p9), [#allocation7], %s3229_s13 }
  0x46   : > { %724 = vperm.xlu1 (!%p577_p9), %3714, %v710_v3   ;;  %714 = vperm.xlu0 (!%p577_p9), %3713, %v708_v4   ;;  %s3686_s27 = smul.u32 (!%p577_p9), 96, %s4007_s25  ;;  %v4074_v54 = vld [vmem:[%s4815_s3 + $0x8] sm:$0xff] (!%p577_p9)  }
  0x47   : > { %s4023_s12 = scalar_lea.vmem (!%p577_p9), [#allocation2], %s3685_s23  ;;  %s3687_s28 = smul.u32 (!%p577_p9), 24, %s4007_s25  ;;  %v1662_v4 = vld [vmem:[%s4819_s7 + $0x28] sm:$0xff] (!%p577_p9) }
  0x48   : > { %v660_v6 = vld [vmem:[%s4023_s12] sm:$0xff] (!%p577_p9)  ;;  %v661_v8 = vld [vmem:[%s4023_s12 + $0x8] sm:$0xff] (!%p577_p9)  ;;  %v662_v30 = vld [vmem:[%s4023_s12 + $0x10] sm:$0xff] (!%p577_p9)  ;;  %s4069_s17 = scalar_lea.vmem (!%p577_p9), [#allocation3], %s3686_s27 }
  0x49   : > { %v668_v7 = vld [vmem:[%s4023_s12 + $0x40] sm:$0xff] (!%p577_p9)  ;;  %v669_v10 = vld [vmem:[%s4023_s12 + $0x48] sm:$0xff] (!%p577_p9)  ;;  %v670_v31 = vld [vmem:[%s4023_s12 + $0x50] sm:$0xff] (!%p577_p9)  ;;  %s4077_s14 = scalar_lea.vmem (!%p577_p9), [#allocation4], %s3687_s28 }
  0x4a   : > { %v3234_v9 = vcombine.high (!%p577_p9), %v660_v6, %v668_v7  ;;  %v3233_v11 = vcombine.low (!%p577_p9), %v660_v6, %v668_v7  ;;  %v676_v12 = vld [vmem:[%s4023_s12 + $0x80] sm:$0xff] (!%p577_p9)  ;;  %v3236_v14 = vcombine.high (!%p577_p9), %v661_v8, %v669_v10  ;;  %v3235_v15 = vcombine.low (!%p577_p9), %v661_v8, %v669_v10  ;;  %v677_v17 = vld [vmem:[%s4023_s12 + $0x88] sm:$0xff] (!%p577_p9)  ;;  %729 = vperm.xlu1 (!%p577_p9), %3714, %v711_v5   ;;  %v663_v32 = vld [vmem:[%s4023_s12 + $0x18] sm:$0xff] (!%p577_p9) }
  0x4b   : > { %v684_v13 = vld [vmem:[%s4023_s12 + $0xc0] sm:$0xff]  ;;  %v685_v18 = vld [vmem:[%s4023_s12 + $0xc8] sm:$0xff]  ;;  %v671_v33 = vld [vmem:[%s4023_s12 + $0x58] sm:$0xff]  ;;  %719 = vperm.xlu0 %3713, %v709_v25   ;;  %v3238_v36 = vcombine.high %v662_v30, %v670_v31  ;;  %v3237_v43 = vcombine.low %v662_v30, %v670_v31  ;;  %s3528_s16 = sshll.u32 (%p3878_p5), %s3859_s20, 6 }
  0x4c   : > { %v3250_v16 = vcombine.high %v676_v12, %v684_v13  ;;  %v692_v19 = vld [vmem:[%s4023_s12 + $0x100] sm:$0xff]  ;;  %989 = vmatprep.subr.bf16.mxu0 %v3234_v9  ;;  %v3252_v20 = vcombine.high %v677_v17, %v685_v18  ;;  %v693_v22 = vld [vmem:[%s4023_s12 + $0x108] sm:$0xff]  ;;  %1042 = vmatprep.subr.bf16.mxu1 %v3236_v14  ;;  %v3249_v24 = vcombine.low %v676_v12, %v684_v13  ;;  %v678_v38 = vld [vmem:[%s4023_s12 + $0x90] sm:$0xff]  ;;  %s4645_s27 = scalar_lea.vmem (%p3878_p5), %s4821_s9, %s3528_s16 }
  0x4d   : > { %v700_v21 = vld [vmem:[%s4023_s12 + $0x140] sm:$0xff]  ;;  %v701_v23 = vld [vmem:[%s4023_s12 + $0x148] sm:$0xff]  ;;  %990 = vmatpush1.bf16.msra.mxu0 %v3233_v11  ;;  %1043 = vmatpush1.bf16.msra.mxu1 %v3235_v15  ;;  %v3251_v27 = vcombine.low %v677_v17, %v685_v18  ;;  %v3240_v37 = vcombine.high %v663_v32, %v671_v33  ;;  %v686_v39 = vld [vmem:[%s4023_s12 + $0xd0] sm:$0xff]  ;;  %v3239_v44 = vcombine.low %v663_v32, %v671_v33 }
  0x4e   : > { %991 = vmatprep.subr.bf16.mxu0 %v3250_v16  ;;  %v3266_v28 = vcombine.high %v692_v19, %v700_v21  ;;  %1044 = vmatprep.subr.bf16.mxu1 %v3252_v20  ;;  %v3268_v29 = vcombine.high %v693_v22, %v701_v23  ;;  %v3265_v34 = vcombine.low %v692_v19, %v700_v21  ;;  %v679_v41 = vld [vmem:[%s4023_s12 + $0x98] sm:$0xff]  ;;  %v694_v47 = vld [vmem:[%s4023_s12 + $0x110] sm:$0xff]  ;;  %v664_v56 = vld [vmem:[%s4023_s12 + $0x20] sm:$0xff] }
  0x4f   : > { %1672 = vperm.xlu1 %3714, %v1658_v26   ;;  %v3267_v35 = vcombine.low %v693_v22, %v701_v23  ;;  %v687_v42 = vld [vmem:[%s4023_s12 + $0xd8] sm:$0xff]  ;;  %v3254_v45 = vcombine.high %v678_v38, %v686_v39  ;;  %v702_v48 = vld [vmem:[%s4023_s12 + $0x150] sm:$0xff]  ;;  %v3253_v51 = vcombine.low %v678_v38, %v686_v39  ;;  %v672_v58 = vld [vmem:[%s4023_s12 + $0x60] sm:$0xff]  ;;  %1667 = vperm.xlu0 %3713, %v1657_v52  }
  0x50   : > { %v3256_v46 = vcombine.high %v679_v41, %v687_v42  ;;  %v695_v49 = vld [vmem:[%s4023_s12 + $0x118] sm:$0xff]  ;;  %v3255_v53 = vcombine.low %v679_v41, %v687_v42  ;;  %v3270_v55 = vcombine.high %v694_v47, %v702_v48  ;;  %v665_v60 = vld [vmem:[%s4023_s12 + $0x28] sm:$0xff]  ;;  %v3269_v61 = vcombine.low %v694_v47, %v702_v48  ;;  %v1661_v5 = vld [vmem:[%s4819_s7 + $0x20] sm:$0xff] }
  0x51   : > { %992 = vmatpush1.bf16.msra.mxu0 %v3249_v24  ;;  %1045 = vmatpush1.bf16.msra.mxu1 %v3251_v27  ;;  %v703_v50 = vld [vmem:[%s4023_s12 + $0x158] sm:$0xff]  ;;  %v673_v62 = vld [vmem:[%s4023_s12 + $0x68] sm:$0xff]  ;;  %v3242_v1 = vcombine.high %v664_v56, %v672_v58  ;;  %v680_v6 = vld [vmem:[%s4023_s12 + $0xa0] sm:$0xff]  ;;  %v3241_v10 = vcombine.low %v664_v56, %v672_v58 }
  0x52   : > { %993 = vmatprep.subr.bf16.mxu0 %v3266_v28  ;;  %1046 = vmatprep.subr.bf16.mxu1 %v3268_v29  ;;  %v3272_v57 = vcombine.high %v695_v49, %v703_v50  ;;  %v3271_v0 = vcombine.low %v695_v49, %v703_v50  ;;  %v3244_v3 = vcombine.high %v665_v60, %v673_v62  ;;  %v688_v7 = vld [vmem:[%s4023_s12 + $0xe0] sm:$0xff]  ;;  %v681_v8 = vld [vmem:[%s4023_s12 + $0xa8] sm:$0xff]  ;;  %v1664_v11 = vld [vmem:[%s4819_s7 + $0x38] sm:$0xff] }
  0x53   : > { %1682 = vperm.xlu1 %3714, %v1660_v59   ;;  %1677 = vperm.xlu0 %3713, %v1659_v63   ;;  %v689_v9 = vld [vmem:[%s4023_s12 + $0xe8] sm:$0xff]  ;;  %v3243_v12 = vcombine.low %v665_v60, %v673_v62  ;;  %v3258_v13 = vcombine.high %v680_v6, %v688_v7  ;;  %v696_v15 = vld [vmem:[%s4023_s12 + $0x120] sm:$0xff]  ;;  %v3257_v19 = vcombine.low %v680_v6, %v688_v7  ;;  %v1663_v20 = vld [vmem:[%s4819_s7 + $0x30] sm:$0xff] }
  0x54   : > { %v3260_v14 = vcombine.high %v681_v8, %v689_v9  ;;  %v704_v16 = vld [vmem:[%s4023_s12 + $0x160] sm:$0xff]  ;;  %v697_v17 = vld [vmem:[%s4023_s12 + $0x128] sm:$0xff]  ;;  %v3259_v21 = vcombine.low %v681_v8, %v689_v9  ;;  %v666_v25 = vld [vmem:[%s4023_s12 + $0x30] sm:$0xff] }
  0x55   : > { %994 = vmatpush1.bf16.msra.mxu0 %v3265_v34  ;;  %1047 = vmatpush1.bf16.msra.mxu1 %v3267_v35  ;;  %v705_v18 = vld [vmem:[%s4023_s12 + $0x168] sm:$0xff]  ;;  %v3274_v22 = vcombine.high %v696_v15, %v704_v16  ;;  %v674_v26 = vld [vmem:[%s4023_s12 + $0x70] sm:$0xff]  ;;  %v667_v27 = vld [vmem:[%s4023_s12 + $0x38] sm:$0xff]  ;;  %v3273_v28 = vcombine.low %v696_v15, %v704_v16 }
  0x56   : > { %1095 = vmatprep.subr.bf16.mxu0 %v3238_v36  ;;  %1148 = vmatprep.subr.bf16.mxu1 %v3240_v37  ;;  %v2094_v23 = vld [vmem:[%s4820_s8 + $0x8] sm:$0xff]  ;;  %v3276_v24 = vcombine.high %v697_v17, %v705_v18  ;;  %v675_v29 = vld [vmem:[%s4023_s12 + $0x78] sm:$0xff]  ;;  %v2093_v30 = vld [vmem:[%s4820_s8] sm:$0xff]  ;;  %v3275_v31 = vcombine.low %v697_v17, %v705_v18  ;;  %v3246_v32 = vcombine.high %v666_v25, %v674_v26 }
  0x57   : > { %1692 = vperm.xlu1 %3714, %v1662_v4   ;;  %1687 = vperm.xlu0 %3713, %v1661_v5   ;;  %v3248_v33 = vcombine.high %v667_v27, %v675_v29  ;;  %v682_v34 = vld [vmem:[%s4023_s12 + $0xb0] sm:$0xff]  ;;  %v2096_v35 = vld [vmem:[%s4820_s8 + $0x18] sm:$0xff]  ;;  %v3245_v41 = vcombine.low %v666_v25, %v674_v26  ;;  %v2098_v42 = vld [vmem:[%s4820_s8 + $0x28] sm:$0xff] }
  0x58   : > { %3281 = vmatmul.mubr.msk.bf16.vlgmr.msra.gmra.mrb[0].mxu0 %vm982_vm0, %v4052_v40  ;;  %3283 = vmatmul.mubr.msk.bf16.vlgmr.msra.gmra.mrb[0].mxu1 %vm982_vm0, %v4052_v40  ;;  %v2095_v36 = vld [vmem:[%s4820_s8 + $0x10] sm:$0xff]  ;;  %v683_v38 = vld [vmem:[%s4023_s12 + $0xb8] sm:$0xff]  ;;  %v2102_v62 = vld [vmem:[%s4820_s8 + $0x48] sm:$0xff] }
  0x59   : > { %1096 = vmatpush1.bf16.msra.mxu0 %v3237_v43  ;;  %1149 = vmatpush1.bf16.msra.mxu1 %v3239_v44  ;;  %v690_v37 = vld [vmem:[%s4023_s12 + $0xf0] sm:$0xff]  ;;  %v691_v39 = vld [vmem:[%s4023_s12 + $0xf8] sm:$0xff]  ;;  %v3247_v43 = vcombine.low %v667_v27, %v675_v29  ;;  %v2101_v63 = vld [vmem:[%s4820_s8 + $0x40] sm:$0xff] }
  0x5a   : > { %1097 = vmatprep.subr.bf16.mxu0 %v3254_v45  ;;  %1150 = vmatprep.subr.bf16.mxu1 %v3256_v46  ;;  %v3262_v44 = vcombine.high %v682_v34, %v690_v37  ;;  %v3264_v45 = vcombine.high %v683_v38, %v691_v39  ;;  %v698_v46 = vld [vmem:[%s4023_s12 + $0x130] sm:$0xff]  ;;  %v699_v48 = vld [vmem:[%s4023_s12 + $0x138] sm:$0xff]  ;;  %v3261_v50 = vcombine.low %v682_v34, %v690_v37  ;;  %v2106_v8 = vld [vmem:[%s4820_s8 + $0x68] sm:$0xff] }
  0x5b   : > { %1031 = vmatprep.mubr.bf16.mxu0 %v3782_v2  ;;  %1084 = vmatprep.mubr.bf16.mxu1 %v3782_v2  ;;  %v706_v47 = vld [vmem:[%s4023_s12 + $0x170] sm:$0xff]  ;;  %v707_v49 = vld [vmem:[%s4023_s12 + $0x178] sm:$0xff]  ;;  %v3263_v52 = vcombine.low %v683_v38, %v691_v39  ;;  %v3734_v15 = vld [vmem:[%s4817_s5 + $0x8] sm:$0xff]  }
  0x5c   : > { %1702 = vperm.xlu1 %3714, %v1664_v11   ;;  %1697 = vperm.xlu0 %3713, %v1663_v20   ;;  %v3280_v56 = vcombine.high %v699_v48, %v707_v49  ;;  %v2099_v58 = vld [vmem:[%s4820_s8 + $0x30] sm:$0xff]  ;;  %v3279_v59 = vcombine.low %v699_v48, %v707_v49  ;;  %v3729_v11 = vld [vmem:[%s4817_s5] sm:$0xff]   ;;  %v2110_v17 = vld [vmem:[%s4820_s8 + $0x88] sm:$0xff] }
  0x5d   : > { %1098 = vmatpush1.bf16.msra.mxu0 %v3253_v51  ;;  %1151 = vmatpush1.bf16.msra.mxu1 %v3255_v53  ;;  %v2097_v51 = vld [vmem:[%s4820_s8 + $0x20] sm:$0xff]  ;;  %v3278_v53 = vcombine.high %v698_v46, %v706_v47  ;;  %v2103_v5 = vld [vmem:[%s4820_s8 + $0x50] sm:$0xff]  ;;  %v3731_v18 = vld [vmem:[%s4069_s17 + $0x8] ss:$16 sps:$4 sm:$0xff]  }
  0x5e   : > { %1099 = vmatprep.subr.bf16.mxu0 %v3270_v55  ;;  %1152 = vmatprep.subr.bf16.mxu1 %v3272_v57  ;;  %v2100_v55 = vld [vmem:[%s4820_s8 + $0x38] sm:$0xff]  ;;  %v3277_v57 = vcombine.low %v698_v46, %v706_v47  ;;  %v3719_v60 = vld [vmem:[%s4069_s17 + $0x4] ss:$16 sps:$4 sm:$0xff]   ;;  %v3721_v6 = vld [vmem:[%s4069_s17 + $0x20] ss:$16 sps:$4 sm:$0xff]  }
  0x5f   : > { %v3723_v4 = vld [vmem:[%s4069_s17 + $0x24] ss:$16 sps:$4 sm:$0xff]   ;;  %v3736_v26 = vld [vmem:[%s4816_s4 + $0x8] sm:$0xff]   ;;  %v2120_v38 = vld [vmem:[%s4820_s8 + $0xd8] sm:$0xff] }
  0x60   : > { %3282 = vmatmul.mubr.msk.bf16.gmra.mrb[4].mxu0 %vm982_vm0, %v4074_v54  ;;  %3284 = vmatmul.mubr.msk.bf16.gmra.mrb[4].mxu1 %vm982_vm0, %v4074_v54  ;;  %v3728_v7 = vld [vmem:[%s4077_s14 + $0x10] sm:$0xff]   ;;  %v2109_v20 = vld [vmem:[%s4820_s8 + $0x80] sm:$0xff]  ;;  %v3749_v39 = vld [vmem:[%s4817_s5 + $0x38] sm:$0xff]  }
  0x61   : > { %1100 = vmatpush1.bf16.msra.mxu0 %v3269_v61  ;;  %1153 = vmatpush1.bf16.msra.mxu1 %v3271_v0  ;;  %v3720_v61 = vld [vmem:[%s4077_s14] sm:$0xff]   ;;  %v3735_v16 = vld [vmem:[%s4817_s5 + $0x10] sm:$0xff]   ;;  %v3751_v47 = vld [vmem:[%s4817_s5 + $0x48] sm:$0xff]  }
  0x62   : > { %1127 = vmatprep.mubr.bf16.mxu0 %v3782_v2  ;;  %1180 = vmatprep.mubr.bf16.mxu1 %v3782_v2  ;;  %v2104_v0 = vld [vmem:[%s4820_s8 + $0x58] sm:$0xff]  ;;  %v3727_v9 = vld [vmem:[%s4069_s17 + $0x44] ss:$16 sps:$4 sm:$0xff]  }
  0x63   : > { %1201 = vmatprep.subr.bf16.mxu0 %v3242_v1  ;;  %1254 = vmatprep.subr.bf16.mxu1 %v3244_v3  ;;  %v3717_v1 = vld [vmem:[%s4069_s17] ss:$16 sps:$4 sm:$0xff]   ;;  %v3744_v29 = vld [vmem:[%s4069_s17 + $0x48] ss:$16 sps:$4 sm:$0xff]  }
  0x64   : > { %2132 = vperm.xlu1 %3714, %v2094_v23   ;;  %2127 = vperm.xlu0 %3713, %v2093_v30   ;;  %v3724_v3 = vld [vmem:[%s4077_s14 + $0x8] sm:$0xff]   ;;  %v2111_v25 = vld [vmem:[%s4820_s8 + $0x90] sm:$0xff]  ;;  %v2124_v46 = vld [vmem:[%s4820_s8 + $0xf8] sm:$0xff]  ;;  %s3228_s14 = sshll.u32 %s4007_s25, 8  ;;  %s4539_s25 = scalar_lea.vmem [#allocation6], %s3229_s13 }
  0x65   : > { %v3746_v23 = vld [vmem:[%s4069_s17 + $0x4c] ss:$16 sps:$4 sm:$0xff]   ;;  %v3741_v27 = vld [vmem:[%s4817_s5 + $0x20] sm:$0xff]   ;;  %v3742_v34 = vld [vmem:[%s4816_s4 + $0x10] sm:$0xff]   ;;  %s4406_s30 = scalar_lea.vmem [#allocation5], %s3228_s14 }
  0x66   : > { %v2113_v30 = vld [vmem:[%s4820_s8 + $0xa0] sm:$0xff]  ;;  %v2123_v48 = vld [vmem:[%s4820_s8 + $0xf0] sm:$0xff] }
  0x67   : > { %v2117_v37 = vld [vmem:[%s4820_s8 + $0xc0] sm:$0xff]  ;;  %v3752_v49 = vld [vmem:[%s4817_s5 + $0x50] sm:$0xff]  }
  0x68   : > { %3285 = vmatmul.mubr.msk.bf16.vlgmr.msra.gmra.mrb[8].mxu0 %vm982_vm0, %v4052_v40  ;;  %3287 = vmatmul.mubr.msk.bf16.vlgmr.msra.gmra.mrb[8].mxu1 %vm982_vm0, %v4052_v40 }
  0x69   : > { %1202 = vmatpush1.bf16.msra.mxu0 %v3241_v10  ;;  %1255 = vmatpush1.bf16.msra.mxu1 %v3243_v12  ;;  %v3725_v10 = vld [vmem:[%s4069_s17 + $0x40] ss:$16 sps:$4 sm:$0xff]   ;;  %v3733_v12 = vld [vmem:[%s4069_s17 + $0xc] ss:$16 sps:$4 sm:$0xff]  }
  0x6a   : > { %1203 = vmatprep.subr.bf16.mxu0 %v3258_v13  ;;  %1256 = vmatprep.subr.bf16.mxu1 %v3260_v14  ;;  %v2108_v13 = vld [vmem:[%s4820_s8 + $0x78] sm:$0xff]  ;;  %v2107_v14 = vld [vmem:[%s4820_s8 + $0x70] sm:$0xff] }
  0x6b   : > { %1137 = vmatprep.mubr.bf16.mxu0 %v3782_v2  ;;  %1190 = vmatprep.mubr.bf16.mxu1 %v3782_v2 }
  0x6c   : > { %2142 = vperm.xlu1 %3714, %v2096_v35   ;;  %2137 = vperm.xlu0 %3713, %v2095_v36   ;;  %v3747_v35 = vld [vmem:[%s4817_s5 + $0x30] sm:$0xff]   ;;  %v2118_v36 = vld [vmem:[%s4820_s8 + $0xc8] sm:$0xff] }
  0x6d   : > { %1204 = vmatpush1.bf16.msra.mxu0 %v3257_v19  ;;  %1257 = vmatpush1.bf16.msra.mxu1 %v3259_v21  ;;  %v3740_v19 = vld [vmem:[%s4069_s17 + $0x2c] ss:$16 sps:$4 sm:$0xff]  }
  0x6e   : > { %1205 = vmatprep.subr.bf16.mxu0 %v3274_v22  ;;  %1258 = vmatprep.subr.bf16.mxu1 %v3276_v24  ;;  %v2112_v21 = vld [vmem:[%s4820_s8 + $0x98] sm:$0xff] }
  0x6f   : > { %v3738_v22 = vld [vmem:[%s4069_s17 + $0x28] ss:$16 sps:$4 sm:$0xff]  }
  0x70   : > { %3286 = vmatmul.mubr.msk.bf16.gmra.mrb[12].mxu0 %vm982_vm0, %v4074_v54  ;;  %3288 = vmatmul.mubr.msk.bf16.gmra.mrb[12].mxu1 %vm982_vm0, %v4074_v54  ;;  %v3737_v24 = vld [vmem:[%s4817_s5 + $0x18] sm:$0xff]  }
  0x71   : > { %1206 = vmatpush1.bf16.msra.mxu0 %v3273_v28  ;;  %1259 = vmatpush1.bf16.msra.mxu1 %v3275_v31  ;;  %v2114_v28 = vld [vmem:[%s4820_s8 + $0xa8] sm:$0xff]  ;;  %v2116_v31 = vld [vmem:[%s4820_s8 + $0xb8] sm:$0xff] }
  0x72   : > { %1233 = vmatprep.mubr.bf16.mxu0 %v3782_v2  ;;  %1286 = vmatprep.mubr.bf16.mxu1 %v3782_v2 }
  0x73   : > { %1307 = vmatprep.subr.bf16.mxu0 %v3246_v32  ;;  %1360 = vmatprep.subr.bf16.mxu1 %v3248_v33  ;;  %v3743_v32 = vld [vmem:[%s4817_s5 + $0x28] sm:$0xff]   ;;  %v2115_v33 = vld [vmem:[%s4820_s8 + $0xb0] sm:$0xff] }
  0x74   : > { %2152 = vperm.xlu1 %3714, %v2098_v42   ;;  %2147 = vperm.xlu0 %3713, %v2097_v51   ;;  %v3748_v42 = vld [vmem:[%s4816_s4 + $0x18] sm:$0xff]   ;;  %v3754_v51 = vld [vmem:[%s4817_s5 + $0x60] sm:$0xff]  }
  0x78   : > { %3289 = vmatmul.mubr.msk.bf16.vlgmr.msra.gmra.mrb[16].mxu0 %vm982_vm0, %v4052_v40  ;;  %3291 = vmatmul.mubr.msk.bf16.vlgmr.msra.gmra.mrb[16].mxu1 %vm982_vm0, %v4052_v40 }
  0x79   : > { %1308 = vmatpush1.bf16.msra.mxu0 %v3245_v41  ;;  %1361 = vmatpush1.bf16.msra.mxu1 %v3247_v43  ;;  %v2119_v41 = vld [vmem:[%s4820_s8 + $0xd0] sm:$0xff]  ;;  %v3750_v43 = vld [vmem:[%s4817_s5 + $0x40] sm:$0xff]  }
  0x7a   : > { %1309 = vmatprep.subr.bf16.mxu0 %v3262_v44  ;;  %1362 = vmatprep.subr.bf16.mxu1 %v3264_v45  ;;  %v2122_v44 = vld [vmem:[%s4820_s8 + $0xe8] sm:$0xff]  ;;  %v2121_v45 = vld [vmem:[%s4820_s8 + $0xe0] sm:$0xff] }
  0x7b   : > { %1243 = vmatprep.mubr.bf16.mxu0 %v3782_v2  ;;  %1296 = vmatprep.mubr.bf16.mxu1 %v3782_v2 }
  0x7c   : > { %2162 = vperm.xlu1 %3714, %v2100_v55   ;;  %2157 = vperm.xlu0 %3713, %v2099_v58   ;;  %v3757_v55 = vld [vmem:[%s4817_s5 + $0x78] sm:$0xff]  }
  0x7d   : > { %1310 = vmatpush1.bf16.msra.mxu0 %v3261_v50  ;;  %1363 = vmatpush1.bf16.msra.mxu1 %v3263_v52  ;;  %v3753_v50 = vld [vmem:[%s4817_s5 + $0x58] sm:$0xff]   ;;  %v3755_v52 = vld [vmem:[%s4817_s5 + $0x68] sm:$0xff]  }
  0x7e   : > { %1311 = vmatprep.subr.bf16.mxu0 %v3278_v53  ;;  %1364 = vmatprep.subr.bf16.mxu1 %v3280_v56  ;;  %v3756_v53 = vld [vmem:[%s4817_s5 + $0x70] sm:$0xff]  }
  0x80   : > { %3290 = vmatmul.mubr.msk.bf16.gmra.mrb[20].mxu0 %vm982_vm0, %v4074_v54  ;;  %3292 = vmatmul.mubr.msk.bf16.gmra.mrb[20].mxu1 %vm982_vm0, %v4074_v54 }
  0x81   : > { %1312 = vmatpush1.bf16.msra.mxu0 %v3277_v57  ;;  %1365 = vmatpush1.bf16.msra.mxu1 %v3279_v59 }
  0x82   : > { %1339 = vmatprep.mubr.bf16.mxu0 %v3782_v2  ;;  %1392 = vmatprep.mubr.bf16.mxu1 %v3782_v2 }
  0x83   : > { %1797 = vmatprep.subr.bf16.mxu1 %v3719_v60  ;;  %3644 = vmatprep.subr.bf16.mxu0 %v3720_v61 }
  0x84   : > { %2172 = vperm.xlu1 %3714, %v2102_v62   ;;  %2167 = vperm.xlu0 %3713, %v2101_v63  }
  0x88   : > { %3293 = vmatmul.mubr.msk.bf16.vlgmr.msra.gmra.mrb[24].mxu0 %vm982_vm0, %v4052_v40  ;;  %2182 = vperm.xlu1 %3714, %v2104_v0  }
  0x89   : > { %3295 = vmatmul.mubr.msk.bf16.vlgmr.msra.gmra.mrb[24].mxu1 %vm982_vm0, %v4052_v40  ;;  %3645 = vmatpush3.bf16.msra.mxu0 %v3720_v61  ;;  %v2105_v40 = vld [vmem:[%s4820_s8 + $0x60] sm:$0xff] }
  0x8a   : > { %1798 = vmatpush1.bf16.msra.mxu1 %v3717_v1  ;;  %3646 = vmatprep.subr.bf16.mxu0 %v3724_v3 }
  0x8b   : > { %1799 = vmatprep.subr.bf16.mxu1 %v3723_v4  ;;  %1349 = vmatprep.mubr.bf16.mxu0 %v3782_v2 }
  0x8c   : > { %1402 = vmatprep.mubr.bf16.mxu1 %v3782_v2  ;;  %2177 = vperm.xlu0 %3713, %v2103_v5  }
  0x8d   : > { %3647 = vmatpush3.bf16.msra.mxu0 %v3724_v3  ;;  %2192 = vperm.xlu1 %3714, %v2106_v8  }
  0x8e   : > { %1800 = vmatpush1.bf16.msra.mxu1 %v3721_v6  ;;  %3648 = vmatprep.subr.bf16.mxu0 %v3728_v7 }
  0x8f   : > { %1801 = vmatprep.subr.bf16.mxu1 %v3727_v9 }
  0x90   : > { %3294 = vmatmul.mubr.msk.bf16.gmra.mrb[28].mxu0 %vm982_vm0, %v4074_v54  ;;  %2187 = vperm.xlu0 %3713, %v2105_v40  }
  0x91   : > { %3296 = vmatmul.mubr.msk.bf16.gmra.mrb[28].mxu1 %vm982_vm0, %v4074_v54  ;;  %3649 = vmatpush3.bf16.msra.mxu0 %v3728_v7  ;;  %v4231_v54 = vld [vmem:[%s4816_s4] sm:$0xff]  }
  0x92   : > { %1802 = vmatpush1.bf16.msra.mxu1 %v3725_v10  ;;  %1829 = vmatprep.mubr.bf16.mxu1 %v3782_v2 }
  0x93   : > { %3650 = vmatprep.mubr.msk.bf16.mxu0 %vm982_vm0, %v3729_v11  ;;  %1870 = vmatprep.subr.bf16.mxu1 %v3733_v12 }
  0x94   : > { %2202 = vperm.xlu1 %3714, %v2108_v13   ;;  %2197 = vperm.xlu0 %3713, %v2107_v14  }
  0x98   : > { %3651 = vmatmul.mubr.msk.bf16.vlgmr.msra.gmra.mrb[32].mxu0 %vm982_vm0, %v3734_v15  ;;  %2212 = vperm.xlu1 %3714, %v2110_v17  }
  0x99   : > { %3345 = vmatmul.mubr.msk.bf16.vlgmr.msra.gmra.mrb[32].mxu1 %vm982_vm0, %v4231_v54  ;;  %3654 = vmatprep.mubr.msk.bf16.mxu0 %vm982_vm0, %v3735_v16 }
  0x9a   : > { %1871 = vmatpush1.bf16.msra.mxu1 %v3731_v18  ;;  %1839 = vmatprep.mubr.bf16.mxu1 %v3782_v2 }
  0x9b   : > { %1872 = vmatprep.subr.bf16.mxu1 %v3740_v19  ;;  %2207 = vperm.xlu0 %3713, %v2109_v20  }
  0x9c   : > { %2222 = vperm.xlu1 %3714, %v2112_v21  }
  0x9e   : > { %1873 = vmatpush1.bf16.msra.mxu1 %v3738_v22 }
  0x9f   : > { %1874 = vmatprep.subr.bf16.mxu1 %v3746_v23  ;;  %2217 = vperm.xlu0 %3713, %v2111_v25  }
  0xa0   : > { %3655 = vmatmul.mubr.msk.bf16.gmra.mrb[36].mxu0 %vm982_vm0, %v3737_v24  ;;  %2232 = vperm.xlu1 %3714, %v2114_v28  }
  0xa1   : > { %3346 = vmatmul.mubr.msk.bf16.gmra.mrb[36].mxu1 %vm982_vm0, %v3736_v26  ;;  %3658 = vmatprep.mubr.msk.bf16.mxu0 %vm982_vm0, %v3741_v27 }
  0xa2   : > { %1849 = vmatprep.mubr.bf16.mxu1 %v3782_v2  ;;  %1875 = vmatpush1.bf16.msra.mxu1 %v3744_v29 }
  0xa3   : > { %2227 = vperm.xlu0 %3713, %v2113_v30  }
  0xa4   : > { %2242 = vperm.xlu1 %3714, %v2116_v31  }
  0xa7   : > { %2237 = vperm.xlu0 %3713, %v2115_v33  }
  0xa8   : > { %3659 = vmatmul.mubr.msk.bf16.gmra.mrb[40].mxu0 %vm982_vm0, %v3743_v32  ;;  %2252 = vperm.xlu1 %3714, %v2118_v36  }
  0xa9   : > { %3347 = vmatmul.mubr.msk.bf16.gmra.mrb[40].mxu1 %vm982_vm0, %v3742_v34  ;;  %3662 = vmatprep.mubr.msk.bf16.mxu0 %vm982_vm0, %v3747_v35 }
  0xaa   : > { %1859 = vmatprep.mubr.bf16.mxu1 %v3782_v2 }
  0xab   : > { %2247 = vperm.xlu0 %3713, %v2117_v37  }
  0xac   : > { %2262 = vperm.xlu1 %3714, %v2120_v38  }
  0xaf   : > { %2257 = vperm.xlu0 %3713, %v2119_v41  }
  0xb0   : > { %3663 = vmatmul.mubr.msk.bf16.gmra.mrb[44].mxu0 %vm982_vm0, %v3749_v39  ;;  %2272 = vperm.xlu1 %3714, %v2122_v44  }
  0xb1   : > { %3348 = vmatmul.mubr.msk.bf16.gmra.mrb[44].mxu1 %vm982_vm0, %v3748_v42  ;;  %3666 = vmatprep.mubr.msk.bf16.mxu0 %vm982_vm0, %v3750_v43 }
  0xb2   : > { %1902 = vmatprep.mubr.bf16.mxu1 %v3782_v2 }
  0xb3   : > { %2267 = vperm.xlu0 %3713, %v2121_v45  }
  0xb4   : > { %2282 = vperm.xlu1 %3714, %v2124_v46  }
  0xb7   : > { %2277 = vperm.xlu0 %3713, %v2123_v48  }
  0xb8   : > { %3667 = vmatmul.mubr.msk.bf16.gmra.mrb[48].mxu0 %vm982_vm0, %v3751_v47 }
  0xb9   : > { %3349 = vmatmul.mubr.msk.bf16.vlgmr.msra.gmra.mrb[48].mxu1 %vm982_vm0, %v4231_v54  ;;  %3670 = vmatprep.mubr.msk.bf16.mxu0 %vm982_vm0, %v3752_v49 }
  0xba   : > { %1912 = vmatprep.mubr.bf16.mxu1 %v3782_v2 }
  0xc0   : > { %3671 = vmatmul.mubr.msk.bf16.gmra.mrb[52].mxu0 %vm982_vm0, %v3753_v50 }
  0xc1   : > { %3350 = vmatmul.mubr.msk.bf16.gmra.mrb[52].mxu1 %vm982_vm0, %v3736_v26  ;;  %3674 = vmatprep.mubr.msk.bf16.mxu0 %vm982_vm0, %v3754_v51 }
  0xc2   : > { %1922 = vmatprep.mubr.bf16.mxu1 %v3782_v2 }
  0xc5   : > { %v4369_v56 = vpop.permute.xlu1 %724  ;;  %v4371_v57 = vpop.permute.xlu0 %714 }
  0xc8   : > { %3675 = vmatmul.mubr.msk.bf16.gmra.mrb[56].mxu0 %vm982_vm0, %v3755_v52 }
  0xc9   : > { %3351 = vmatmul.mubr.msk.bf16.gmra.mrb[56].mxu1 %vm982_vm0, %v3742_v34  ;;  %3678 = vmatprep.mubr.msk.bf16.mxu0 %vm982_vm0, %v3756_v53  ;;  %v4373_v58 = vpop.permute.xlu1 %729 }
  0xca   : > { %1932 = vmatprep.mubr.bf16.mxu1 %v3782_v2  ;;  %v4375_v59 = vpop.permute.xlu0 %719 }
  0xce   : > { %v4377_v60 = vpop.permute.xlu1 %1672  ;;  %v4379_v2 = vpop.permute.xlu0 %1667 }
  0xd0   : > { %3679 = vmatmul.mubr.msk.bf16.gmra.mrb[60].mxu0 %vm982_vm0, %v3757_v55 }
  0xd1   : > { %3352 = vmatmul.mubr.msk.bf16.gmra.mrb[60].mxu1 %vm982_vm0, %v3748_v42 }
  0xd2   : > { %v4381_v61 = vpop.permute.xlu1 %1682  ;;  %v4383_v62 = vpop.permute.xlu0 %1677 }
  0xd6   : > { %v4385_v63 = vpop.permute.xlu1 %1692  ;;  %v4387_v0 = vpop.permute.xlu0 %1687 }
  0xdb   : > { %v4389_v1 = vpop.permute.xlu1 %1702  ;;  %v4391_v3 = vpop.permute.xlu0 %1697 }
  0xe3   : > { %v4393_v4 = vpop.permute.xlu1 %2132  ;;  %v4395_v5 = vpop.permute.xlu0 %2127 }
  0xeb   : > { %v4409_v23 = vpop.permute.xlu1 %2142  ;;  %v4412_v25 = vpop.permute.xlu0 %2137 }
  0xf3   : > { %v4425_v46 = vpop.permute.xlu1 %2152  ;;  %v4428_v48 = vpop.permute.xlu0 %2147 }
 0x12b   : > { %v1023_v6 = vpop.f32.mrb[0].mxu0  ;;  %v1076_v8 = vpop.f32.mrb[0].mxu1 }
 0x12c   : > { %v1024_v7 = vadd.f32 %v1023_v6, %v4371_v57  ;;  %v1025_v9 = vpop.f32.mrb[1].mxu0  ;;  %v1077_v40 = vadd.f32 %v1076_v8, %v4371_v57  ;;  %v1078_v11 = vpop.f32.mrb[1].mxu1 }
 0x12d   : > { %v1026_v10 = vadd.f32 %v1025_v9, %v4371_v57  ;;  %v1027_v12 = vpop.f32.mrb[2].mxu0  ;;  %v1079_v13 = vadd.f32 %v1078_v11, %v4371_v57  ;;  %v1080_v15 = vpop.f32.mrb[2].mxu1 }
 0x12e   : > { %v1028_v14 = vadd.f32 %v1027_v12, %v4375_v59  ;;  %v1029_v54 = vpop.f32.mrb[3].mxu0  ;;  %v1081_v17 = vadd.f32 %v1080_v15, %v4375_v59  ;;  %v1082_v19 = vpop.f32.mrb[3].mxu1 }
 0x12f   : > { %v3448_v16 = vpack.c.bf16 %v1026_v10, %v1024_v7  ;;  %v1030_v18 = vadd.f32 %v1029_v54, %v4375_v59  ;;  %v3449_v20 = vpack.c.bf16 %v1079_v13, %v1077_v40  ;;  %v1083_v21 = vadd.f32 %v1082_v19, %v4375_v59  ;;  %v4444_v19 = vpop.permute.xlu0 %2157 }
 0x131   : > { %1605 = vst [vmem:[%s4406_s30] sm:$0xff] %v3448_v16  ;;  %v3456_v22 = vpack.c.bf16 %v1030_v18, %v1028_v14  ;;  %1606 = vst [vmem:[%s4406_s30 + $0x8] sm:$0xff] %v3449_v20  ;;  %v3457_v24 = vpack.c.bf16 %v1083_v21, %v1081_v17  ;;  %v4441_v17 = vpop.permute.xlu1 %2162 }
 0x133   : > { %1613 = vst [vmem:[%s4406_s30 + $0x40] sm:$0xff] %v3456_v22  ;;  %v1033_v26 = vpop.f32.mrb[4].mxu0  ;;  %1614 = vst [vmem:[%s4406_s30 + $0x48] sm:$0xff] %v3457_v24  ;;  %v1086_v28 = vpop.f32.mrb[4].mxu1 }
 0x134   : > { %v1034_v27 = vadd.f32 %v1033_v26, %v4369_v56  ;;  %v1035_v29 = vpop.f32.mrb[5].mxu0  ;;  %v1087_v30 = vadd.f32 %v1086_v28, %v4369_v56  ;;  %v1088_v32 = vpop.f32.mrb[5].mxu1 }
 0x135   : > { %v1036_v31 = vadd.f32 %v1035_v29, %v4369_v56  ;;  %v1037_v33 = vpop.f32.mrb[6].mxu0  ;;  %v1089_v34 = vadd.f32 %v1088_v32, %v4369_v56  ;;  %v1090_v36 = vpop.f32.mrb[6].mxu1 }
 0x136   : > { %v1038_v35 = vadd.f32 %v1037_v33, %v4373_v58  ;;  %v1039_v37 = vpop.f32.mrb[7].mxu0  ;;  %v1091_v39 = vadd.f32 %v1090_v36, %v4373_v58  ;;  %v1092_v42 = vpop.f32.mrb[7].mxu1 }
 0x137   : > { %v3464_v38 = vpack.c.bf16 %v1036_v31, %v1034_v27  ;;  %v1040_v41 = vadd.f32 %v1039_v37, %v4373_v58  ;;  %v3465_v43 = vpack.c.bf16 %v1089_v34, %v1087_v30  ;;  %v1093_v44 = vadd.f32 %v1092_v42, %v4373_v58  ;;  %v4457_v42 = vpop.permute.xlu1 %2172 }
 0x139   : > { %1621 = vst [vmem:[%s4406_s30 + $0x80] sm:$0xff] %v3464_v38  ;;  %v3472_v45 = vpack.c.bf16 %v1040_v41, %v1038_v35  ;;  %1622 = vst [vmem:[%s4406_s30 + $0x88] sm:$0xff] %v3465_v43  ;;  %v3473_v47 = vpack.c.bf16 %v1093_v44, %v1091_v39  ;;  %v4460_v44 = vpop.permute.xlu0 %2167 }
 0x13b   : > { %1629 = vst [vmem:[%s4406_s30 + $0xc0] sm:$0xff] %v3472_v45  ;;  %v1129_v49 = vpop.f32.mrb[8].mxu0  ;;  %1630 = vst [vmem:[%s4406_s30 + $0xc8] sm:$0xff] %v3473_v47  ;;  %v1182_v51 = vpop.f32.mrb[8].mxu1 }
 0x13c   : > { %v1130_v50 = vadd.f32 %v1129_v49, %v4371_v57  ;;  %v1131_v52 = vpop.f32.mrb[9].mxu0  ;;  %v1183_v53 = vadd.f32 %v1182_v51, %v4371_v57  ;;  %v1184_v6 = vpop.f32.mrb[9].mxu1 }
 0x13d   : > { %v1132_v55 = vadd.f32 %v1131_v52, %v4371_v57  ;;  %v1133_v7 = vpop.f32.mrb[10].mxu0  ;;  %v1185_v8 = vadd.f32 %v1184_v6, %v4371_v57  ;;  %v1186_v40 = vpop.f32.mrb[10].mxu1 }
 0x13e   : > { %v1134_v9 = vadd.f32 %v1133_v7, %v4375_v59  ;;  %v1135_v10 = vpop.f32.mrb[11].mxu0  ;;  %v1187_v12 = vadd.f32 %v1186_v40, %v4375_v59  ;;  %v1188_v14 = vpop.f32.mrb[11].mxu1 }
 0x13f   : > { %v3450_v11 = vpack.c.bf16 %v1132_v55, %v1130_v50  ;;  %v1136_v13 = vadd.f32 %v1135_v10, %v4375_v59  ;;  %v3451_v15 = vpack.c.bf16 %v1185_v8, %v1183_v53  ;;  %v1189_v54 = vadd.f32 %v1188_v14, %v4375_v59 }
 0x141   : > { %1607 = vst [vmem:[%s4406_s30 + $0x10] sm:$0xff] %v3450_v11  ;;  %v3458_v16 = vpack.c.bf16 %v1136_v13, %v1134_v9  ;;  %1608 = vst [vmem:[%s4406_s30 + $0x18] sm:$0xff] %v3451_v15  ;;  %v3459_v18 = vpack.c.bf16 %v1189_v54, %v1187_v12  ;;  %v4473_v54 = vpop.permute.xlu1 %2182 }
 0x143   : > { %1615 = vst [vmem:[%s4406_s30 + $0x50] sm:$0xff] %v3458_v16  ;;  %v1139_v20 = vpop.f32.mrb[12].mxu0  ;;  %1616 = vst [vmem:[%s4406_s30 + $0x58] sm:$0xff] %v3459_v18  ;;  %v1192_v22 = vpop.f32.mrb[12].mxu1 }
 0x144   : > { %v1140_v21 = vadd.f32 %v1139_v20, %v4369_v56  ;;  %v1141_v24 = vpop.f32.mrb[13].mxu0  ;;  %v1193_v26 = vadd.f32 %v1192_v22, %v4369_v56  ;;  %v1194_v28 = vpop.f32.mrb[13].mxu1 }
 0x145   : > { %v1142_v27 = vadd.f32 %v1141_v24, %v4369_v56  ;;  %v1143_v29 = vpop.f32.mrb[14].mxu0  ;;  %v1195_v30 = vadd.f32 %v1194_v28, %v4369_v56  ;;  %v1196_v32 = vpop.f32.mrb[14].mxu1 }
 0x146   : > { %v1144_v31 = vadd.f32 %v1143_v29, %v4373_v58  ;;  %v1145_v33 = vpop.f32.mrb[15].mxu0  ;;  %v1197_v35 = vadd.f32 %v1196_v32, %v4373_v58  ;;  %v1198_v37 = vpop.f32.mrb[15].mxu1 }
 0x147   : > { %v3466_v34 = vpack.c.bf16 %v1142_v27, %v1140_v21  ;;  %v1146_v36 = vadd.f32 %v1145_v33, %v4373_v58  ;;  %v3467_v38 = vpack.c.bf16 %v1195_v30, %v1193_v26  ;;  %v1199_v39 = vadd.f32 %v1198_v37, %v4373_v58  ;;  %v4476_v18 = vpop.permute.xlu0 %2177 }
 0x149   : > { %1623 = vst [vmem:[%s4406_s30 + $0x90] sm:$0xff] %v3466_v34  ;;  %v3474_v41 = vpack.c.bf16 %v1146_v36, %v1144_v31  ;;  %1624 = vst [vmem:[%s4406_s30 + $0x98] sm:$0xff] %v3467_v38  ;;  %v3475_v43 = vpack.c.bf16 %v1199_v39, %v1197_v35 }
 0x14b   : > { %1631 = vst [vmem:[%s4406_s30 + $0xd0] sm:$0xff] %v3474_v41  ;;  %v1235_v45 = vpop.f32.mrb[16].mxu0  ;;  %1632 = vst [vmem:[%s4406_s30 + $0xd8] sm:$0xff] %v3475_v43  ;;  %v1288_v49 = vpop.f32.mrb[16].mxu1 }
 0x14c   : > { %v1236_v47 = vadd.f32 %v1235_v45, %v4371_v57  ;;  %v1237_v50 = vpop.f32.mrb[17].mxu0  ;;  %v1289_v51 = vadd.f32 %v1288_v49, %v4371_v57  ;;  %v1290_v53 = vpop.f32.mrb[17].mxu1 }
 0x14d   : > { %v1238_v52 = vadd.f32 %v1237_v50, %v4371_v57  ;;  %v1239_v55 = vpop.f32.mrb[18].mxu0  ;;  %v1291_v6 = vadd.f32 %v1290_v53, %v4371_v57  ;;  %v1292_v8 = vpop.f32.mrb[18].mxu1 }
 0x14e   : > { %v1240_v7 = vadd.f32 %v1239_v55, %v4375_v59  ;;  %v1241_v9 = vpop.f32.mrb[19].mxu0  ;;  %v1293_v10 = vadd.f32 %v1292_v8, %v4375_v59  ;;  %v1294_v12 = vpop.f32.mrb[19].mxu1 }
 0x14f   : > { %v3452_v40 = vpack.c.bf16 %v1238_v52, %v1236_v47  ;;  %v1242_v11 = vadd.f32 %v1241_v9, %v4375_v59  ;;  %v3453_v13 = vpack.c.bf16 %v1291_v6, %v1289_v51  ;;  %v1295_v14 = vadd.f32 %v1294_v12, %v4375_v59  ;;  %v4489_v43 = vpop.permute.xlu1 %2192  ;;  %v4492_v47 = vpop.permute.xlu0 %2187 }
 0x151   : > { %1609 = vst [vmem:[%s4406_s30 + $0x20] sm:$0xff] %v3452_v40  ;;  %v3460_v15 = vpack.c.bf16 %v1242_v11, %v1240_v7  ;;  %1610 = vst [vmem:[%s4406_s30 + $0x28] sm:$0xff] %v3453_v13  ;;  %v3461_v16 = vpack.c.bf16 %v1295_v14, %v1293_v10 }
 0x153   : > { %1617 = vst [vmem:[%s4406_s30 + $0x60] sm:$0xff] %v3460_v15  ;;  %v1245_v20 = vpop.f32.mrb[20].mxu0  ;;  %1618 = vst [vmem:[%s4406_s30 + $0x68] sm:$0xff] %v3461_v16  ;;  %v1298_v22 = vpop.f32.mrb[20].mxu1 }
 0x154   : > { %v1246_v21 = vadd.f32 %v1245_v20, %v4369_v56  ;;  %v1247_v24 = vpop.f32.mrb[21].mxu0  ;;  %v1299_v26 = vadd.f32 %v1298_v22, %v4369_v56  ;;  %v1300_v28 = vpop.f32.mrb[21].mxu1 }
 0x155   : > { %v1248_v27 = vadd.f32 %v1247_v24, %v4369_v56  ;;  %v1249_v29 = vpop.f32.mrb[22].mxu0  ;;  %v1301_v30 = vadd.f32 %v1300_v28, %v4369_v56  ;;  %v1302_v32 = vpop.f32.mrb[22].mxu1 }
 0x156   : > { %v1250_v31 = vadd.f32 %v1249_v29, %v4373_v58  ;;  %v1251_v33 = vpop.f32.mrb[23].mxu0  ;;  %v1303_v35 = vadd.f32 %v1302_v32, %v4373_v58  ;;  %v1304_v37 = vpop.f32.mrb[23].mxu1 }
 0x157   : > { %v3468_v34 = vpack.c.bf16 %v1248_v27, %v1246_v21  ;;  %v1252_v36 = vadd.f32 %v1251_v33, %v4373_v58  ;;  %v3469_v38 = vpack.c.bf16 %v1301_v30, %v1299_v26  ;;  %v1305_v39 = vadd.f32 %v1304_v37, %v4373_v58  ;;  %v4505_v21 = vpop.permute.xlu1 %2202  ;;  %v4508_v22 = vpop.permute.xlu0 %2197 }
 0x159   : > { %1625 = vst [vmem:[%s4406_s30 + $0xa0] sm:$0xff] %v3468_v34  ;;  %v3476_v41 = vpack.c.bf16 %v1252_v36, %v1250_v31  ;;  %1626 = vst [vmem:[%s4406_s30 + $0xa8] sm:$0xff] %v3469_v38  ;;  %v3477_v45 = vpack.c.bf16 %v1305_v39, %v1303_v35 }
 0x15b   : > { %1633 = vst [vmem:[%s4406_s30 + $0xe0] sm:$0xff] %v3476_v41  ;;  %v1341_v49 = vpop.f32.mrb[24].mxu0  ;;  %1634 = vst [vmem:[%s4406_s30 + $0xe8] sm:$0xff] %v3477_v45 }
 0x15c   : > { %v1342_v50 = vadd.f32 %v1341_v49, %v4371_v57  ;;  %v1394_v51 = vpop.f32.mrb[24].mxu1  ;;  %v1343_v52 = vpop.f32.mrb[25].mxu0 }
 0x15d   : > { %v1395_v53 = vadd.f32 %v1394_v51, %v4371_v57  ;;  %v1344_v55 = vadd.f32 %v1343_v52, %v4371_v57  ;;  %v1396_v6 = vpop.f32.mrb[25].mxu1  ;;  %v1345_v7 = vpop.f32.mrb[26].mxu0 }
 0x15e   : > { %v1397_v8 = vadd.f32 %v1396_v6, %v4371_v57  ;;  %v1346_v9 = vadd.f32 %v1345_v7, %v4375_v59  ;;  %v1398_v40 = vpop.f32.mrb[26].mxu1  ;;  %v1347_v10 = vpop.f32.mrb[27].mxu0 }
 0x15f   : > { %v3454_v11 = vpack.c.bf16 %v1344_v55, %v1342_v50  ;;  %v1399_v12 = vadd.f32 %v1398_v40, %v4375_v59  ;;  %v1348_v13 = vadd.f32 %v1347_v10, %v4375_v59  ;;  %v1400_v14 = vpop.f32.mrb[27].mxu1  ;;  %v4521_v50 = vpop.permute.xlu1 %2212 }
 0x160   : > { %v3455_v15 = vpack.c.bf16 %v1397_v8, %v1395_v53  ;;  %v1401_v16 = vadd.f32 %v1400_v14, %v4375_v59  ;;  %v4524_v51 = vpop.permute.xlu0 %2207 }
 0x161   : > { %1611 = vst [vmem:[%s4406_s30 + $0x30] sm:$0xff] %v3454_v11  ;;  %v3462_v20 = vpack.c.bf16 %v1348_v13, %v1346_v9 }
 0x162   : > { %1612 = vst [vmem:[%s4406_s30 + $0x38] sm:$0xff] %v3455_v15  ;;  %v3463_v57 = vpack.c.bf16 %v1401_v16, %v1399_v12 }
 0x163   : > { %1619 = vst [vmem:[%s4406_s30 + $0x70] sm:$0xff] %v3462_v20  ;;  %v1351_v24 = vpop.f32.mrb[28].mxu0 }
 0x164   : > { %1620 = vst [vmem:[%s4406_s30 + $0x78] sm:$0xff] %v3463_v57  ;;  %v1352_v26 = vadd.f32 %v1351_v24, %v4369_v56  ;;  %v1404_v27 = vpop.f32.mrb[28].mxu1  ;;  %v1353_v28 = vpop.f32.mrb[29].mxu0 }
 0x165   : > { %v1405_v29 = vadd.f32 %v1404_v27, %v4369_v56  ;;  %v1354_v59 = vadd.f32 %v1353_v28, %v4369_v56  ;;  %v1406_v30 = vpop.f32.mrb[29].mxu1  ;;  %v1355_v31 = vpop.f32.mrb[30].mxu0 }
 0x166   : > { %v1407_v32 = vadd.f32 %v1406_v30, %v4369_v56  ;;  %v1356_v33 = vadd.f32 %v1355_v31, %v4373_v58  ;;  %v1408_v34 = vpop.f32.mrb[30].mxu1  ;;  %v1357_v35 = vpop.f32.mrb[31].mxu0 }
 0x167   : > { %v3470_v36 = vpack.c.bf16 %v1354_v59, %v1352_v26  ;;  %v1409_v37 = vadd.f32 %v1408_v34, %v4373_v58  ;;  %v1358_v38 = vadd.f32 %v1357_v35, %v4373_v58  ;;  %v1410_v39 = vpop.f32.mrb[31].mxu1  ;;  %v4537_v26 = vpop.permute.xlu1 %2222 }
 0x168   : > { %v3471_v41 = vpack.c.bf16 %v1407_v32, %v1405_v29  ;;  %v1411_v45 = vadd.f32 %v1410_v39, %v4373_v58 }
 0x169   : > { %1627 = vst [vmem:[%s4406_s30 + $0xb0] sm:$0xff] %v3470_v36  ;;  %v3478_v49 = vpack.c.bf16 %v1358_v38, %v1356_v33 }
 0x16a   : > { %1628 = vst [vmem:[%s4406_s30 + $0xb8] sm:$0xff] %v3471_v41  ;;  %v3479_v56 = vpack.c.bf16 %v1411_v45, %v1409_v37 }
 0x16b   : > { %1635 = vst [vmem:[%s4406_s30 + $0xf0] sm:$0xff] %v3478_v49  ;;  %v3652_v52 = vpop.f32.mrb[32].mxu0  ;;  %v4557_v49 = vpop.permute.xlu1 %2232 }
 0x16c   : > { %1636 = vst [vmem:[%s4406_s30 + $0xf8] sm:$0xff] %v3479_v56  ;;  %v1831_v53 = vpop.f32.mrb[32].mxu1  ;;  %v2465_v55 = vpop.f32.mrb[33].mxu0  ;;  %v2474_v58 = vadd.f32 %v3652_v52, %v4412_v25 }
 0x16d   : > { %v1832_v6 = vadd.f32 %v1831_v53, %v4379_v2  ;;  %v1833_v7 = vpop.f32.mrb[33].mxu1  ;;  %v3653_v8 = vpop.f32.mrb[34].mxu0  ;;  %v2466_v12 = vadd.f32 %v2465_v55, %v4395_v5 }
 0x16e   : > { %v1834_v9 = vadd.f32 %v1833_v7, %v4379_v2  ;;  %v1835_v40 = vpop.f32.mrb[34].mxu1  ;;  %v2477_v10 = vadd.f32 %v3653_v8, %v4409_v23  ;;  %v2468_v11 = vpop.f32.mrb[35].mxu0 }
 0x16f   : > { %v1836_v13 = vadd.f32 %v1835_v40, %v4377_v60  ;;  %v1837_v14 = vpop.f32.mrb[35].mxu1  ;;  %v2469_v15 = vadd.f32 %v2468_v11, %v4393_v4  ;;  %v4545_v23 = vpop.permute.xlu0 %2217 }
 0x170   : > { %v3480_v16 = vpack.c.bf16 %v1834_v9, %v1832_v6  ;;  %v3538_v20 = vpack.c.bf16 %v2477_v10, %v2474_v58  ;;  %v1838_v57 = vadd.f32 %v1837_v14, %v4377_v60 }
 0x171   : > { %v3533_v24 = vpack.c.bf16 %v2469_v15, %v2466_v12 }
 0x172   : > { %2039 = vst [vmem:[%s4539_s25] sm:$0xff] %v3480_v16  ;;  %3610 = vst [vmem:[%s4542_s15 + $0x8] sm:$0xff] %v3538_v20   ;;  %v3482_v5 = vpack.c.bf16 %v1838_v57, %v1836_v13  ;;  %v4573_v20 = vpop.permute.xlu1 %2242 }
 0x173   : > { %3534 = vst [vmem:[%s4542_s15] sm:$0xff] %v3533_v24   ;;  %v3656_v4 = vpop.f32.mrb[36].mxu0 }
 0x174   : > { %2041 = vst [vmem:[%s4539_s25 + $0x10] sm:$0xff] %v3482_v5  ;;  %v1841_v25 = vpop.f32.mrb[36].mxu1  ;;  %v2481_v27 = vpop.f32.mrb[37].mxu0  ;;  %v2490_v30 = vadd.f32 %v3656_v4, %v4444_v19 }
 0x175   : > { %v1842_v28 = vadd.f32 %v1841_v25, %v4383_v62  ;;  %v1843_v29 = vpop.f32.mrb[37].mxu1  ;;  %v3657_v59 = vpop.f32.mrb[38].mxu0  ;;  %v2482_v35 = vadd.f32 %v2481_v27, %v4428_v48 }
 0x176   : > { %v1844_v31 = vadd.f32 %v1843_v29, %v4383_v62  ;;  %v1845_v32 = vpop.f32.mrb[38].mxu1  ;;  %v2493_v33 = vadd.f32 %v3657_v59, %v4441_v17  ;;  %v2484_v34 = vpop.f32.mrb[39].mxu0 }
 0x177   : > { %v1846_v36 = vadd.f32 %v1845_v32, %v4381_v61  ;;  %v1847_v37 = vpop.f32.mrb[39].mxu1  ;;  %v2485_v38 = vadd.f32 %v2484_v34, %v4425_v46  ;;  %v4561_v17 = vpop.permute.xlu0 %2227 }
 0x178   : > { %v3484_v39 = vpack.c.bf16 %v1844_v31, %v1842_v28  ;;  %v3548_v41 = vpack.c.bf16 %v2493_v33, %v2490_v30  ;;  %v1848_v45 = vadd.f32 %v1847_v37, %v4381_v61 }
 0x179   : > { %v3543_v19 = vpack.c.bf16 %v2485_v38, %v2482_v35  ;;  %v4587_v38 = vpop.permute.xlu1 %2252 }
 0x17a   : > { %2043 = vst [vmem:[%s4539_s25 + $0x20] sm:$0xff] %v3484_v39  ;;  %3612 = vst [vmem:[%s4542_s15 + $0x18] sm:$0xff] %v3548_v41   ;;  %v3486_v56 = vpack.c.bf16 %v1848_v45, %v1846_v36 }
 0x17b   : > { %3611 = vst [vmem:[%s4542_s15 + $0x10] sm:$0xff] %v3543_v19   ;;  %v3660_v52 = vpop.f32.mrb[40].mxu0 }
 0x17c   : > { %2045 = vst [vmem:[%s4539_s25 + $0x30] sm:$0xff] %v3486_v56  ;;  %v1851_v48 = vpop.f32.mrb[40].mxu1  ;;  %v2497_v53 = vpop.f32.mrb[41].mxu0  ;;  %v2506_v7 = vadd.f32 %v3660_v52, %v4476_v18 }
 0x17d   : > { %v1852_v55 = vadd.f32 %v1851_v48, %v4387_v0  ;;  %v1853_v46 = vpop.f32.mrb[41].mxu1  ;;  %v3661_v6 = vpop.f32.mrb[42].mxu0  ;;  %v2498_v10 = vadd.f32 %v2497_v53, %v4460_v44 }
 0x17e   : > { %v1854_v8 = vadd.f32 %v1853_v46, %v4387_v0  ;;  %v1855_v58 = vpop.f32.mrb[42].mxu1  ;;  %v2509_v9 = vadd.f32 %v3661_v6, %v4473_v54  ;;  %v2500_v40 = vpop.f32.mrb[43].mxu0 }
 0x17f   : > { %v1856_v11 = vadd.f32 %v1855_v58, %v4385_v63  ;;  %v1857_v12 = vpop.f32.mrb[43].mxu1  ;;  %v2501_v13 = vadd.f32 %v2500_v40, %v4457_v42  ;;  %v2238_v54 = vpop.permute.xlu0 %2237 }
 0x180   : > { %v3488_v14 = vpack.c.bf16 %v1854_v8, %v1852_v55  ;;  %v3558_v15 = vpack.c.bf16 %v2509_v9, %v2506_v7  ;;  %v1858_v16 = vadd.f32 %v1857_v12, %v4385_v63 }
 0x181   : > { %v3553_v18 = vpack.c.bf16 %v2501_v13, %v2498_v10 }
 0x182   : > { %2047 = vst [vmem:[%s4539_s25 + $0x40] sm:$0xff] %v3488_v14  ;;  %3614 = vst [vmem:[%s4542_s15 + $0x28] sm:$0xff] %v3558_v15   ;;  %v3490_v57 = vpack.c.bf16 %v1858_v16, %v1856_v11  ;;  %v2263_v11 = vpop.permute.xlu1 %2262 }
 0x183   : > { %3613 = vst [vmem:[%s4542_s15 + $0x20] sm:$0xff] %v3553_v18   ;;  %v3664_v24 = vpop.f32.mrb[44].mxu0 }
 0x184   : > { %2049 = vst [vmem:[%s4539_s25 + $0x50] sm:$0xff] %v3490_v57  ;;  %v1861_v44 = vpop.f32.mrb[44].mxu1  ;;  %v2513_v5 = vpop.f32.mrb[45].mxu0  ;;  %v2522_v27 = vadd.f32 %v3664_v24, %v4508_v22 }
 0x185   : > { %v1862_v4 = vadd.f32 %v1861_v44, %v4391_v3  ;;  %v1863_v25 = vpop.f32.mrb[45].mxu1  ;;  %v3665_v42 = vpop.f32.mrb[46].mxu0  ;;  %v2514_v31 = vadd.f32 %v2513_v5, %v4492_v47 }
 0x186   : > { %v1864_v28 = vadd.f32 %v1863_v25, %v4391_v3  ;;  %v1865_v29 = vpop.f32.mrb[46].mxu1  ;;  %v2525_v59 = vadd.f32 %v3665_v42, %v4505_v21  ;;  %v2516_v30 = vpop.f32.mrb[47].mxu0 }
 0x187   : > { %v1866_v32 = vadd.f32 %v1865_v29, %v4389_v1  ;;  %v1867_v33 = vpop.f32.mrb[47].mxu1  ;;  %v2517_v34 = vadd.f32 %v2516_v30, %v4489_v43  ;;  %v4591_v21 = vpop.permute.xlu0 %2247 }
 0x188   : > { %v3492_v35 = vpack.c.bf16 %v1864_v28, %v1862_v4  ;;  %v3568_v36 = vpack.c.bf16 %v2525_v59, %v2522_v27  ;;  %v1868_v37 = vadd.f32 %v1867_v33, %v4389_v1  ;;  %v2273_v29 = vpop.permute.xlu1 %2272 }
 0x189   : > { %v3563_v22 = vpack.c.bf16 %v2517_v34, %v2514_v31 }
 0x18a   : > { %2051 = vst [vmem:[%s4539_s25 + $0x60] sm:$0xff] %v3492_v35  ;;  %3616 = vst [vmem:[%s4542_s15 + $0x38] sm:$0xff] %v3568_v36   ;;  %v3494_v39 = vpack.c.bf16 %v1868_v37, %v1866_v32 }
 0x18b   : > { %3615 = vst [vmem:[%s4542_s15 + $0x30] sm:$0xff] %v3563_v22   ;;  %v3668_v41 = vpop.f32.mrb[48].mxu0  ;;  %v2258_v12 = vpop.permute.xlu0 %2257 }
 0x18c   : > { %2053 = vst [vmem:[%s4539_s25 + $0x70] sm:$0xff] %v3494_v39  ;;  %v1904_v47 = vpop.f32.mrb[48].mxu1  ;;  %v2529_v45 = vpop.f32.mrb[49].mxu0  ;;  %v2538_v52 = vadd.f32 %v3668_v41, %v4545_v23 }
 0x18d   : > { %v1905_v19 = vadd.f32 %v1904_v47, %v4379_v2  ;;  %v1906_v43 = vpop.f32.mrb[49].mxu1  ;;  %v3669_v56 = vpop.f32.mrb[50].mxu0  ;;  %v2530_v6 = vadd.f32 %v2529_v45, %v4524_v51 }
 0x18e   : > { %v1907_v48 = vadd.f32 %v1906_v43, %v4379_v2  ;;  %v1908_v53 = vpop.f32.mrb[50].mxu1  ;;  %v2541_v55 = vadd.f32 %v3669_v56, %v4537_v26  ;;  %v2532_v46 = vpop.f32.mrb[51].mxu0 }
 0x18f   : > { %v1909_v7 = vadd.f32 %v1908_v53, %v4377_v60  ;;  %v1910_v8 = vpop.f32.mrb[51].mxu1  ;;  %v2533_v58 = vadd.f32 %v2532_v46, %v4521_v50  ;;  %v2268_v59 = vpop.permute.xlu0 %2267 }
 0x190   : > { %v3481_v9 = vpack.c.bf16 %v1907_v48, %v1905_v19  ;;  %v3578_v40 = vpack.c.bf16 %v2541_v55, %v2538_v52  ;;  %v1911_v10 = vadd.f32 %v1910_v8, %v4377_v60  ;;  %v2283_v56 = vpop.permute.xlu1 %2282 }
 0x191   : > { %v3573_v23 = vpack.c.bf16 %v2533_v58, %v2530_v6 }
 0x192   : > { %2040 = vst [vmem:[%s4539_s25 + $0x8] sm:$0xff] %v3481_v9  ;;  %3618 = vst [vmem:[%s4542_s15 + $0x48] sm:$0xff] %v3578_v40   ;;  %v3483_v2 = vpack.c.bf16 %v1911_v10, %v1909_v7 }
 0x193   : > { %3617 = vst [vmem:[%s4542_s15 + $0x40] sm:$0xff] %v3573_v23   ;;  %v3672_v26 = vpop.f32.mrb[52].mxu0  ;;  %v2278_v52 = vpop.permute.xlu0 %2277 }
 0x194   : > { %2042 = vst [vmem:[%s4539_s25 + $0x18] sm:$0xff] %v3483_v2  ;;  %v1914_v13 = vpop.f32.mrb[52].mxu1  ;;  %v2545_v51 = vpop.f32.mrb[53].mxu0  ;;  %v2554_v16 = vadd.f32 %v3672_v26, %v2238_v54 }
 0x195   : > { %v1915_v14 = vadd.f32 %v1914_v13, %v4383_v62  ;;  %v1916_v15 = vpop.f32.mrb[53].mxu1  ;;  %v3673_v50 = vpop.f32.mrb[54].mxu0  ;;  %v2546_v44 = vadd.f32 %v2545_v51, %v4561_v17  ;;  %v2786_v51 = vld [vmem:[%s4406_s30 + $0x10] sm:$0xff] (%p3878_p5) }
 0x196   : > { %v1917_v60 = vadd.f32 %v1916_v15, %v4383_v62  ;;  %v1918_v18 = vpop.f32.mrb[54].mxu1  ;;  %v2557_v57 = vadd.f32 %v3673_v50, %v4573_v20  ;;  %v2548_v24 = vpop.f32.mrb[55].mxu0  ;;  %v2790_v15 = vld [vmem:[%s4406_s30 + $0x20] sm:$0xff] (%p3878_p5)  ;;  %v2792_v50 = vld [vmem:[%s4406_s30 + $0x28] sm:$0xff] (%p3878_p5)  ;;  %2787 = vst [vmem:[%s4645_s27 + $0x10] sm:$0xff] (%p3878_p5), %v2786_v51 }
 0x197   : > { %v1919_v5 = vadd.f32 %v1918_v18, %v4381_v61  ;;  %v1920_v4 = vpop.f32.mrb[55].mxu1  ;;  %v2549_v25 = vadd.f32 %v2548_v24, %v4557_v49  ;;  %2791 = vst [vmem:[%s4645_s27 + $0x20] sm:$0xff] (%p3878_p5), %v2790_v15  ;;  %2793 = vst [vmem:[%s4645_s27 + $0x28] sm:$0xff] (%p3878_p5), %v2792_v50  ;;  %v2798_v18 = vld [vmem:[%s4406_s30 + $0x40] sm:$0xff] (%p3878_p5)  ;;  %v2802_v24 = vld [vmem:[%s4406_s30 + $0x50] sm:$0xff] (%p3878_p5) }
 0x198   : > { %v3485_v42 = vpack.c.bf16 %v1917_v60, %v1915_v14  ;;  %v3588_v27 = vpack.c.bf16 %v2557_v57, %v2554_v16  ;;  %v1921_v28 = vadd.f32 %v1920_v4, %v4381_v61  ;;  %v2788_v14 = vld [vmem:[%s4406_s30 + $0x18] sm:$0xff] (%p3878_p5)  ;;  %v2794_v16 = vld [vmem:[%s4406_s30 + $0x30] sm:$0xff] (%p3878_p5)  ;;  %2799 = vst [vmem:[%s4645_s27 + $0x80] sm:$0xff] (%p3878_p5), %v2798_v18  ;;  %v2800_v57 = vld [vmem:[%s4406_s30 + $0x48] sm:$0xff] (%p3878_p5) }
 0x199   : > { %v3583_v54 = vpack.c.bf16 %v2549_v25, %v2546_v44  ;;  %2789 = vst [vmem:[%s4645_s27 + $0x18] sm:$0xff] (%p3878_p5), %v2788_v14  ;;  %v2796_v60 = vld [vmem:[%s4406_s30 + $0x38] sm:$0xff] (%p3878_p5)  ;;  %2795 = vst [vmem:[%s4645_s27 + $0x30] sm:$0xff] (%p3878_p5), %v2794_v16  ;;  %v2808_v4 = vld [vmem:[%s4406_s30 + $0x68] sm:$0xff] (%p3878_p5) }
 0x19a   : > { %2044 = vst [vmem:[%s4539_s25 + $0x28] sm:$0xff] %v3485_v42  ;;  %3620 = vst [vmem:[%s4542_s15 + $0x58] sm:$0xff] %v3588_v27   ;;  %v3487_v62 = vpack.c.bf16 %v1921_v28, %v1919_v5  ;;  %v2804_v44 = vld [vmem:[%s4406_s30 + $0x58] sm:$0xff] (%p3878_p5)  ;;  %v2806_v5 = vld [vmem:[%s4406_s30 + $0x60] sm:$0xff] (%p3878_p5) }
 0x19b   : > { %3619 = vst [vmem:[%s4542_s15 + $0x50] sm:$0xff] %v3583_v54   ;;  %v3676_v20 = vpop.f32.mrb[56].mxu0  ;;  %2797 = vst [vmem:[%s4645_s27 + $0x38] sm:$0xff] (%p3878_p5), %v2796_v60  ;;  %v2810_v25 = vld [vmem:[%s4406_s30 + $0x70] sm:$0xff] (%p3878_p5)  ;;  %v2812_v42 = vld [vmem:[%s4406_s30 + $0x78] sm:$0xff] (%p3878_p5) }
 0x19c   : > { %2046 = vst [vmem:[%s4539_s25 + $0x38] sm:$0xff] %v3487_v62  ;;  %v1924_v30 = vpop.f32.mrb[56].mxu1  ;;  %v2561_v17 = vpop.f32.mrb[57].mxu0  ;;  %v2570_v33 = vadd.f32 %v3676_v20, %v2258_v12  ;;  %2801 = vst [vmem:[%s4645_s27 + $0x88] sm:$0xff] (%p3878_p5), %v2800_v57  ;;  %v2814_v27 = vld [vmem:[%s4406_s30 + $0x80] sm:$0xff] (%p3878_p5)  ;;  %v2816_v28 = vld [vmem:[%s4406_s30 + $0x88] sm:$0xff] (%p3878_p5) }
 0x19d   : > { %v1925_v31 = vadd.f32 %v1924_v30, %v4387_v0  ;;  %v1926_v32 = vpop.f32.mrb[57].mxu1  ;;  %v3677_v49 = vpop.f32.mrb[58].mxu0  ;;  %v2562_v37 = vadd.f32 %v2561_v17, %v4591_v21  ;;  %2803 = vst [vmem:[%s4645_s27 + $0x90] sm:$0xff] (%p3878_p5), %v2802_v24  ;;  %2805 = vst [vmem:[%s4645_s27 + $0x98] sm:$0xff] (%p3878_p5), %v2804_v44  ;;  %v2818_v54 = vld [vmem:[%s4406_s30 + $0x90] sm:$0xff] (%p3878_p5)  ;;  %v2822_v62 = vld [vmem:[%s4406_s30 + $0xa0] sm:$0xff] (%p3878_p5) }
 0x19e   : > { %v1927_v61 = vadd.f32 %v1926_v32, %v4387_v0  ;;  %v1928_v34 = vpop.f32.mrb[58].mxu1  ;;  %v2573_v35 = vadd.f32 %v3677_v49, %v2263_v11  ;;  %v2564_v36 = vpop.f32.mrb[59].mxu0  ;;  %2807 = vst [vmem:[%s4645_s27 + $0xa0] sm:$0xff] (%p3878_p5), %v2806_v5  ;;  %2809 = vst [vmem:[%s4645_s27 + $0xa8] sm:$0xff] (%p3878_p5), %v2808_v4  ;;  %v2826_v20 = vld [vmem:[%s4406_s30 + $0xb0] sm:$0xff] (%p3878_p5)  ;;  %v2828_v30 = vld [vmem:[%s4406_s30 + $0xb8] sm:$0xff] (%p3878_p5) }
 0x19f   : > { %v1929_v22 = vadd.f32 %v1928_v34, %v4385_v63  ;;  %v1930_v39 = vpop.f32.mrb[59].mxu1  ;;  %v2565_v41 = vadd.f32 %v2564_v36, %v4587_v38  ;;  %2811 = vst [vmem:[%s4645_s27 + $0xb0] sm:$0xff] (%p3878_p5), %v2810_v25  ;;  %2813 = vst [vmem:[%s4645_s27 + $0xb8] sm:$0xff] (%p3878_p5), %v2812_v42  ;;  %v2830_v17 = vld [vmem:[%s4406_s30 + $0xc0] sm:$0xff] (%p3878_p5)  ;;  %v2834_v32 = vld [vmem:[%s4406_s30 + $0xd0] sm:$0xff] (%p3878_p5) }
 0x1a0   : > { %v3489_v47 = vpack.c.bf16 %v1927_v61, %v1925_v31  ;;  %v3598_v45 = vpack.c.bf16 %v2573_v35, %v2570_v33  ;;  %v1931_v19 = vadd.f32 %v1930_v39, %v4385_v63  ;;  %2815 = vst [vmem:[%s4645_s27 + $0x100] sm:$0xff] (%p3878_p5), %v2814_v27  ;;  %2817 = vst [vmem:[%s4645_s27 + $0x108] sm:$0xff] (%p3878_p5), %v2816_v28  ;;  %v2832_v31 = vld [vmem:[%s4406_s30 + $0xc8] sm:$0xff] (%p3878_p5)  ;;  %v2836_v49 = vld [vmem:[%s4406_s30 + $0xd8] sm:$0xff] (%p3878_p5) }
 0x1a1   : > { %v3593_v43 = vpack.c.bf16 %v2565_v41, %v2562_v37  ;;  %2819 = vst [vmem:[%s4645_s27 + $0x110] sm:$0xff] (%p3878_p5), %v2818_v54  ;;  %2823 = vst [vmem:[%s4645_s27 + $0x120] sm:$0xff] (%p3878_p5), %v2822_v62  ;;  %v2838_v33 = vld [vmem:[%s4406_s30 + $0xe0] sm:$0xff] (%p3878_p5)  ;;  %v2840_v61 = vld [vmem:[%s4406_s30 + $0xe8] sm:$0xff] (%p3878_p5) }
 0x1a2   : > { %2048 = vst [vmem:[%s4539_s25 + $0x48] sm:$0xff] %v3489_v47  ;;  %3622 = vst [vmem:[%s4542_s15 + $0x68] sm:$0xff] %v3598_v45   ;;  %v3491_v0 = vpack.c.bf16 %v1931_v19, %v1929_v22  ;;  %v2842_v34 = vld [vmem:[%s4406_s30 + $0xf0] sm:$0xff] (%p3878_p5)  ;;  %v2844_v35 = vld [vmem:[%s4406_s30 + $0xf8] sm:$0xff] (%p3878_p5) }
 0x1a3   : > { %3621 = vst [vmem:[%s4542_s15 + $0x60] sm:$0xff] %v3593_v43   ;;  %v3680_v48 = vpop.f32.mrb[60].mxu0  ;;  %2827 = vst [vmem:[%s4645_s27 + $0x130] sm:$0xff] (%p3878_p5), %v2826_v20 }
 0x1a4   : > { %2050 = vst [vmem:[%s4539_s25 + $0x58] sm:$0xff] %v3491_v0  ;;  %v1934_v53 = vpop.f32.mrb[60].mxu1  ;;  %v2577_v21 = vpop.f32.mrb[61].mxu0  ;;  %v2586_v6 = vadd.f32 %v3680_v48, %v2278_v52  ;;  %2829 = vst [vmem:[%s4645_s27 + $0x138] sm:$0xff] (%p3878_p5), %v2828_v30 }
 0x1a5   : > { %v1935_v55 = vadd.f32 %v1934_v53, %v4391_v3  ;;  %v1936_v46 = vpop.f32.mrb[61].mxu1  ;;  %v3681_v38 = vpop.f32.mrb[62].mxu0  ;;  %v2578_v9 = vadd.f32 %v2577_v21, %v2268_v59  ;;  %v2824_v59 = vld [vmem:[%s4406_s30 + $0xa8] sm:$0xff] (%p3878_p5)  ;;  %2831 = vst [vmem:[%s4645_s27 + $0x180] sm:$0xff] (%p3878_p5), %v2830_v17  ;;  %2833 = vst [vmem:[%s4645_s27 + $0x188] sm:$0xff] (%p3878_p5), %v2832_v31 }
 0x1a6   : > { %v1937_v63 = vadd.f32 %v1936_v46, %v4391_v3  ;;  %v1938_v7 = vpop.f32.mrb[62].mxu1  ;;  %v2589_v8 = vadd.f32 %v3681_v38, %v2283_v56  ;;  %v2580_v58 = vpop.f32.mrb[63].mxu0  ;;  %2766 = sbr.rel (!%p3878_p5) target bundleno = 429 (0x1ad), region = 147  ;;  %v2784_v3 = vld [vmem:[%s4406_s30 + $0x8] sm:$0xff] (%p3878_p5)  ;;  %2825 = vst [vmem:[%s4645_s27 + $0x128] sm:$0xff] (%p3878_p5), %v2824_v59  ;;  %2835 = vst [vmem:[%s4645_s27 + $0x190] sm:$0xff] (%p3878_p5), %v2834_v32 }
 0x1a7   : > { %v1939_v40 = vadd.f32 %v1938_v7, %v4389_v1  ;;  %v1940_v10 = vpop.f32.mrb[63].mxu1  ;;  %v2581_v23 = vadd.f32 %v2580_v58, %v2273_v29  ;;  %2785 = vst [vmem:[%s4645_s27 + $0x8] sm:$0xff] (%p3878_p5), %v2784_v3  ;;  %v2820_v29 = vld [vmem:[%s4406_s30 + $0x98] sm:$0xff] (%p3878_p5)  ;;  %2837 = vst [vmem:[%s4645_s27 + $0x198] sm:$0xff] (%p3878_p5), %v2836_v49 }
 0x1a8   : > { %v3493_v11 = vpack.c.bf16 %v1937_v63, %v1935_v55  ;;  %v3608_v2 = vpack.c.bf16 %v2589_v8, %v2586_v6  ;;  %v1941_v12 = vadd.f32 %v1940_v10, %v4389_v1  ;;  %v2782_v1 = vld [vmem:[%s4406_s30] sm:$0xff] (%p3878_p5)  ;;  %2821 = vst [vmem:[%s4645_s27 + $0x118] sm:$0xff] (%p3878_p5), %v2820_v29  ;;  %2839 = vst [vmem:[%s4645_s27 + $0x1a0] sm:$0xff] (%p3878_p5), %v2838_v33 }
 0x1a9   : > { %v3603_v26 = vpack.c.bf16 %v2581_v23, %v2578_v9  ;;  %2783 = vst [vmem:[%s4645_s27] sm:$0xff] (%p3878_p5), %v2782_v1  ;;  %2841 = vst [vmem:[%s4645_s27 + $0x1a8] sm:$0xff] (%p3878_p5), %v2840_v61 }
 0x1aa   : > { %2052 = vst [vmem:[%s4539_s25 + $0x68] sm:$0xff] %v3493_v11  ;;  %3624 = vst [vmem:[%s4542_s15 + $0x78] sm:$0xff] %v3608_v2   ;;  %v3495_v13 = vpack.c.bf16 %v1941_v12, %v1939_v40 }
 0x1ab   : > { %3623 = vst [vmem:[%s4542_s15 + $0x70] sm:$0xff] %v3603_v26   ;;  %2843 = vst [vmem:[%s4645_s27 + $0x1b0] sm:$0xff] (%p3878_p5), %v2842_v34 }
 0x1ac   : > { %2054 = vst [vmem:[%s4539_s25 + $0x78] sm:$0xff] %v3495_v13  ;;  %2845 = vst [vmem:[%s4645_s27 + $0x1b8] sm:$0xff] (%p3878_p5), %v2844_v35 }
 0x1ad PF: > { %2851 = sbr.rel (!%p3878_p5) target bundleno = 439 (0x1b7), region = 170  ;;  %s3529_s17 = sshll.u32 (%p3878_p5), %s3859_s20, 4  ;;  %v2867_v36 = vld [vmem:[%s4539_s25] sm:$0xff] (%p3878_p5)  ;;  %v2869_v37 = vld [vmem:[%s4539_s25 + $0x8] sm:$0xff] (%p3878_p5)  ;;  %v2871_v22 = vld [vmem:[%s4539_s25 + $0x10] sm:$0xff] (%p3878_p5) }
 0x1ae   : > { %s2854_s19 = scalar_lea.vmem (%p3878_p5), %s4822_s10, %s3529_s17  ;;  %v2873_v39 = vld [vmem:[%s4539_s25 + $0x18] sm:$0xff] (%p3878_p5)  ;;  %v2875_v41 = vld [vmem:[%s4539_s25 + $0x20] sm:$0xff] (%p3878_p5)  ;;  %v2877_v47 = vld [vmem:[%s4539_s25 + $0x28] sm:$0xff] (%p3878_p5) }
 0x1af   : > { %2868 = vst [vmem:[%s2854_s19] sm:$0xff] (%p3878_p5), %v2867_v36  ;;  %2870 = vst [vmem:[%s2854_s19 + $0x8] sm:$0xff] (%p3878_p5), %v2869_v37  ;;  %v2879_v45 = vld [vmem:[%s4539_s25 + $0x30] sm:$0xff] (%p3878_p5)  ;;  %v2881_v19 = vld [vmem:[%s4539_s25 + $0x38] sm:$0xff] (%p3878_p5) }
 0x1b0   : > { %2872 = vst [vmem:[%s2854_s19 + $0x20] sm:$0xff] (%p3878_p5), %v2871_v22  ;;  %2874 = vst [vmem:[%s2854_s19 + $0x28] sm:$0xff] (%p3878_p5), %v2873_v39  ;;  %v2883_v43 = vld [vmem:[%s4539_s25 + $0x40] sm:$0xff] (%p3878_p5)  ;;  %v2885_v56 = vld [vmem:[%s4539_s25 + $0x48] sm:$0xff] (%p3878_p5) }
 0x1b1   : > { %2876 = vst [vmem:[%s2854_s19 + $0x40] sm:$0xff] (%p3878_p5), %v2875_v41  ;;  %2878 = vst [vmem:[%s2854_s19 + $0x48] sm:$0xff] (%p3878_p5), %v2877_v47  ;;  %v2887_v0 = vld [vmem:[%s4539_s25 + $0x50] sm:$0xff] (%p3878_p5)  ;;  %v2889_v52 = vld [vmem:[%s4539_s25 + $0x58] sm:$0xff] (%p3878_p5) }
 0x1b2   : > { %2880 = vst [vmem:[%s2854_s19 + $0x60] sm:$0xff] (%p3878_p5), %v2879_v45  ;;  %2882 = vst [vmem:[%s2854_s19 + $0x68] sm:$0xff] (%p3878_p5), %v2881_v19  ;;  %v2891_v48 = vld [vmem:[%s4539_s25 + $0x60] sm:$0xff] (%p3878_p5)  ;;  %v2893_v53 = vld [vmem:[%s4539_s25 + $0x68] sm:$0xff] (%p3878_p5) }
 0x1b3   : > { %2884 = vst [vmem:[%s2854_s19 + $0x80] sm:$0xff] (%p3878_p5), %v2883_v43  ;;  %2886 = vst [vmem:[%s2854_s19 + $0x88] sm:$0xff] (%p3878_p5), %v2885_v56  ;;  %v2895_v21 = vld [vmem:[%s4539_s25 + $0x70] sm:$0xff] (%p3878_p5)  ;;  %v2897_v55 = vld [vmem:[%s4539_s25 + $0x78] sm:$0xff] (%p3878_p5) }
 0x1b4   : > { %2888 = vst [vmem:[%s2854_s19 + $0xa0] sm:$0xff] %v2887_v0  ;;  %2890 = vst [vmem:[%s2854_s19 + $0xa8] sm:$0xff] %v2889_v52 }
 0x1b5   : > { %2892 = vst [vmem:[%s2854_s19 + $0xc0] sm:$0xff] %v2891_v48  ;;  %2894 = vst [vmem:[%s2854_s19 + $0xc8] sm:$0xff] %v2893_v53 }
 0x1b6   : > { %2896 = vst [vmem:[%s2854_s19 + $0xe0] sm:$0xff] %v2895_v21  ;;  %2898 = vst [vmem:[%s2854_s19 + $0xe8] sm:$0xff] %v2897_v55 }
 0x1b7 PF: > { %2904 = sbr.rel (!%p3878_p5) target bundleno = 461 (0x1cd), region = 193  ;;  %s3443_s29 = sshll.u32 (%p3878_p5), %s3859_s20, 2  ;;  %v2922_v46 = vld [vmem:[%s4542_s15] sm:$0xf] (%p3878_p5)  ;;  %v2924_v38 = vld [vmem:[%s4542_s15 + $0x4] sm:$0xf] (%p3878_p5) }
 0x1b8   : > { %s4738_s13 = scalar_lea.vmem (%p3878_p5), %s4823_s11, %s3443_s29  ;;  %v2926_v6 = vld [vmem:[%s4542_s15 + $0x8] sm:$0xf] (%p3878_p5)  ;;  %v2928_v63 = vld [vmem:[%s4542_s15 + $0xc] sm:$0xf] (%p3878_p5)  ;;  %v2930_v7 = vld [vmem:[%s4542_s15 + $0x10] sm:$0xf] (%p3878_p5) }
 0x1b9   : > { %2923 = vst [vmem:[%s4738_s13] sm:$0xf] (%p3878_p5), %v2922_v46  ;;  %2925 = vst [vmem:[%s4738_s13 + $0x8] sm:$0xf] (%p3878_p5), %v2924_v38  ;;  %v2932_v8 = vld [vmem:[%s4542_s15 + $0x14] sm:$0xf] (%p3878_p5) }
 0x1ba   : > { %2927 = vst [vmem:[%s4738_s13 + $0x10] sm:$0xf] (%p3878_p5), %v2926_v6  ;;  %2929 = vst [vmem:[%s4738_s13 + $0x18] sm:$0xf] (%p3878_p5), %v2928_v63  ;;  %v2934_v58 = vld [vmem:[%s4542_s15 + $0x18] sm:$0xf] (%p3878_p5) }
 0x1bb   : > { %2931 = vst [vmem:[%s4738_s13 + $0x20] sm:$0xf] (%p3878_p5), %v2930_v7  ;;  %v2936_v9 = vld [vmem:[%s4542_s15 + $0x1c] sm:$0xf] (%p3878_p5)  ;;  %2933 = vst [vmem:[%s4738_s13 + $0x28] sm:$0xf] (%p3878_p5), %v2932_v8 }
 0x1bc   : > { %2935 = vst [vmem:[%s4738_s13 + $0x30] sm:$0xf] (%p3878_p5), %v2934_v58  ;;  %2937 = vst [vmem:[%s4738_s13 + $0x38] sm:$0xf] (%p3878_p5), %v2936_v9  ;;  %v2938_v40 = vld [vmem:[%s4542_s15 + $0x20] sm:$0xf] (%p3878_p5) }
 0x1bd   : > { %v2940_v10 = vld [vmem:[%s4542_s15 + $0x24] sm:$0xf] (%p3878_p5)  ;;  %v2942_v23 = vld [vmem:[%s4542_s15 + $0x28] sm:$0xf] (%p3878_p5)  ;;  %2939 = vst [vmem:[%s4738_s13 + $0x40] sm:$0xf] (%p3878_p5), %v2938_v40 }
 0x1be   : > { %2941 = vst [vmem:[%s4738_s13 + $0x48] sm:$0xf] %v2940_v10  ;;  %2943 = vst [vmem:[%s4738_s13 + $0x50] sm:$0xf] %v2942_v23  ;;  %v2944_v11 = vld [vmem:[%s4542_s15 + $0x2c] sm:$0xf] }
 0x1bf   : > { %v2946_v2 = vld [vmem:[%s4542_s15 + $0x30] sm:$0xf]  ;;  %v2948_v12 = vld [vmem:[%s4542_s15 + $0x34] sm:$0xf]  ;;  %2945 = vst [vmem:[%s4738_s13 + $0x58] sm:$0xf] %v2944_v11 }
 0x1c0   : > { %2947 = vst [vmem:[%s4738_s13 + $0x60] sm:$0xf] %v2946_v2  ;;  %2949 = vst [vmem:[%s4738_s13 + $0x68] sm:$0xf] %v2948_v12  ;;  %v2950_v26 = vld [vmem:[%s4542_s15 + $0x38] sm:$0xf] }
 0x1c1   : > { %v2952_v13 = vld [vmem:[%s4542_s15 + $0x3c] sm:$0xf]  ;;  %v2954_v1 = vld [vmem:[%s4542_s15 + $0x40] sm:$0xf]  ;;  %2951 = vst [vmem:[%s4738_s13 + $0x70] sm:$0xf] %v2950_v26 }
 0x1c2   : > { %2953 = vst [vmem:[%s4738_s13 + $0x78] sm:$0xf] %v2952_v13  ;;  %2955 = vst [vmem:[%s4738_s13 + $0x80] sm:$0xf] %v2954_v1  ;;  %v2956_v3 = vld [vmem:[%s4542_s15 + $0x44] sm:$0xf] }
 0x1c3   : > { %v2958_v51 = vld [vmem:[%s4542_s15 + $0x48] sm:$0xf]  ;;  %v2960_v14 = vld [vmem:[%s4542_s15 + $0x4c] sm:$0xf]  ;;  %2957 = vst [vmem:[%s4738_s13 + $0x88] sm:$0xf] %v2956_v3 }
 0x1c4   : > { %2959 = vst [vmem:[%s4738_s13 + $0x90] sm:$0xf] %v2958_v51  ;;  %2961 = vst [vmem:[%s4738_s13 + $0x98] sm:$0xf] %v2960_v14  ;;  %v2962_v15 = vld [vmem:[%s4542_s15 + $0x50] sm:$0xf] }
 0x1c5   : > { %v2964_v50 = vld [vmem:[%s4542_s15 + $0x54] sm:$0xf]  ;;  %v2966_v16 = vld [vmem:[%s4542_s15 + $0x58] sm:$0xf]  ;;  %2963 = vst [vmem:[%s4738_s13 + $0xa0] sm:$0xf] %v2962_v15 }
 0x1c6   : > { %2965 = vst [vmem:[%s4738_s13 + $0xa8] sm:$0xf] %v2964_v50  ;;  %2967 = vst [vmem:[%s4738_s13 + $0xb0] sm:$0xf] %v2966_v16  ;;  %v2968_v60 = vld [vmem:[%s4542_s15 + $0x5c] sm:$0xf] }
 0x1c7   : > { %v2970_v18 = vld [vmem:[%s4542_s15 + $0x60] sm:$0xf]  ;;  %v2972_v57 = vld [vmem:[%s4542_s15 + $0x64] sm:$0xf]  ;;  %2969 = vst [vmem:[%s4738_s13 + $0xb8] sm:$0xf] %v2968_v60 }
 0x1c8   : > { %2971 = vst [vmem:[%s4738_s13 + $0xc0] sm:$0xf] %v2970_v18  ;;  %2973 = vst [vmem:[%s4738_s13 + $0xc8] sm:$0xf] %v2972_v57  ;;  %v2974_v24 = vld [vmem:[%s4542_s15 + $0x68] sm:$0xf] }
 0x1c9   : > { %v2976_v44 = vld [vmem:[%s4542_s15 + $0x6c] sm:$0xf]  ;;  %v2978_v5 = vld [vmem:[%s4542_s15 + $0x70] sm:$0xf]  ;;  %2975 = vst [vmem:[%s4738_s13 + $0xd0] sm:$0xf] %v2974_v24 }
 0x1ca   : > { %2977 = vst [vmem:[%s4738_s13 + $0xd8] sm:$0xf] %v2976_v44  ;;  %2979 = vst [vmem:[%s4738_s13 + $0xe0] sm:$0xf] %v2978_v5  ;;  %v2980_v4 = vld [vmem:[%s4542_s15 + $0x74] sm:$0xf] }
 0x1cb   : > { %v2982_v25 = vld [vmem:[%s4542_s15 + $0x78] sm:$0xf]  ;;  %v2984_v42 = vld [vmem:[%s4542_s15 + $0x7c] sm:$0xf]  ;;  %2981 = vst [vmem:[%s4738_s13 + $0xe8] sm:$0xf] %v2980_v4 }
 0x1cc   : > { %2983 = vst [vmem:[%s4738_s13 + $0xf0] sm:$0xf] %v2982_v25  ;;  %2985 = vst [vmem:[%s4738_s13 + $0xf8] sm:$0xf] %v2984_v42 }
 0x1cd PF: > { %p19_p10 = scmp.ge.s32.totalorder %s3862_s21, 4   ;;  %s4826_s17 = smov %s3776_s18 }
 0x1ce   : > { %s4827_s18 = smov %s3872_s24  ;;  %s4828_s19 = smov %s3862_s21 }
 0x1cf   :  { %21 = sbr.rel (!%p19_p10) target bundleno = 2 (0x2), region = 305 }

</bundles_post_ra>
